<compile_context>
chip_gen: v6e
topology: v6e:2x2x1
jax: 0.10.0
libtpu: 0.0.40
codegen_flags: <defaults>
</compile_context>

<pallas_src>
import jax
import jax.numpy as jnp
from jax.experimental import pallas as pl
from jax.experimental.pallas import tpu as pltpu


# Layer order and static conv configs for InceptionC.
#   axis: None -> 1x1 conv, 'w' -> (1,K) conv sliding over W, 'h' -> (K,1) over H
_LAYERS = (
    ('branch1x1',      None, 1),
    ('branch7x7_1',    None, 1),
    ('branch7x7_2',    'w',  7),
    ('branch7x7_3',    'h',  7),
    ('branch7x7dbl_1', None, 1),
    ('branch7x7dbl_2', 'h',  7),
    ('branch7x7dbl_3', 'w',  7),
    ('branch7x7dbl_4', 'h',  7),
    ('branch7x7dbl_5', 'w',  7),
    ('branch_pool',    None, 1),
)


# ----------------------------- fused Pallas kernel -----------------------------

def _make_inception_c_kernel(H, W, base):
    S = H * W

    def shift_flat(x, off):
        """y[:, s] = x[:, s + off] if 0 <= s + off < S else 0 (flat spatial shift)."""
        if off == 0:
            return x
        C = x.shape[0]
        z = jnp.zeros((C, abs(off)), x.dtype)
        if off > 0:
            return jnp.concatenate([x[:, off:], z], axis=1)
        return jnp.concatenate([z, x[:, :S + off]], axis=1)

    def kernel(x_ref, *refs):
        out_ref = refs[-1]
        prm = refs[:-1]                                  # (w0, b0, ..., w9, b9)

        # Within-row column index, for masking W-direction taps at row edges.
        w_idx = jax.lax.broadcasted_iota(jnp.int32, (1, S), 1) % W

        def w_valid(d):
            return (w_idx + d >= 0) & (w_idx + d < W)

        def apply_layer(x, idx):
            _, axis, K = _LAYERS[idx]
            w = prm[2 * idx][...]                        # (Cout, K*Cin), BN scale folded
            b = prm[2 * idx + 1][...]                    # (Cout, 1)
            if K == 1:
                xcol = x
            else:
                cols = []
                for t in range(K):                       # static unroll over taps
                    d = t - K // 2
                    off = d if axis == 'w' else d * W
                    xs = shift_flat(x, off)
                    if axis == 'w' and d != 0:
                        xs = jnp.where(w_valid(d), xs, 0.0)
                    cols.append(xs)
                xcol = jnp.concatenate(cols, axis=0)     # (K*Cin, S) im2col operand
            acc = jnp.dot(w, xcol, preferred_element_type=jnp.float32)  # (Cout, S)
            return jnp.maximum(acc + b, 0.0)             # folded BN + ReLU

        def avg_pool3x3_sum(x):
            # un-normalized 3x3 sum (count_include_pad); 1/9 folded into conv weights
            acc = jnp.zeros_like(x)
            for dh in (-1, 0, 1):
                for dw in (-1, 0, 1):
                    xs = shift_flat(x, dh * W + dw)
                    if dw != 0:
                        xs = jnp.where(w_valid(dw), xs, 0.0)
                    acc = acc + xs
            return acc

        x = x_ref[...].astype(jnp.float32)               # (Cin, S), lane-dense spatial

        b1 = apply_layer(x, 0)

        t = apply_layer(x, 1)
        t = apply_layer(t, 2)
        b7 = apply_layer(t, 3)

        t = apply_layer(x, 4)
        for i in (5, 6, 7, 8):
            t = apply_layer(t, i)
        bd = t

        bp = apply_layer(avg_pool3x3_sum(x), 9)

        out = jnp.concatenate([b1, b7, bd, bp], axis=0)  # (4*base, S) channel concat
        out_ref[...] = out.astype(out_ref.dtype)

    return kernel


# ----------------------------- wrapper -----------------------------

def inception_c_forward(params, x_nchw):
    N, Cin, H, W = x_nchw.shape
    S = H * W
    base = params['base']
    flat = [params['layers'][name][k] for name, _, _ in _LAYERS
            for k in ('w_mat', 'shift')]

    kernel = _make_inception_c_kernel(H, W, base)
    in_specs = [pl.BlockSpec((None, Cin, S), lambda n: (n, 0, 0))]
    in_specs += [pl.BlockSpec(p.shape, lambda n: (0, 0)) for p in flat]

    out = pl.pallas_call(
        kernel,
        out_shape=jax.ShapeDtypeStruct((N, 4 * base, S), x_nchw.dtype),
        grid=(N,),
        in_specs=in_specs,
        out_specs=pl.BlockSpec((None, 4 * base, S), lambda n: (n, 0, 0)),
        compiler_params=pltpu.CompilerParams(
            dimension_semantics=("parallel",)),
    )(x_nchw.reshape(N, Cin, S), *flat)
    return out.reshape(N, 4 * base, H, W)                # already NCHW


# ----------------------------- params -----------------------------

def _init_basic_conv2d(key, cin, cout, kh, kw, extra_scale=1.0):
    kw_, kg, kb, km, kv = jax.random.split(key, 5)
    # PyTorch conv weight layout: (Cout, Cin, kH, kW), bias=False.
    w_oihw = 0.1 * jax.random.normal(kw_, (cout, cin, kh, kw), jnp.float32)
    gamma = 1.0 + 0.1 * jax.random.normal(kg, (cout,), jnp.float32)
    beta = 0.05 * jax.random.normal(kb, (cout,), jnp.float32)
    mean = 0.1 * jax.random.normal(km, (cout,), jnp.float32)
    var = jax.random.uniform(kv, (cout,), jnp.float32, minval=0.5, maxval=1.5)
    eps = 1e-3
    # TODO(synk): BatchNorm is folded in eval/inference mode (running stats);
    # PyTorch training-mode batch statistics are not reproduced.
    bn_scale = gamma / jnp.sqrt(var + eps)
    bn_shift = beta - mean * bn_scale

    # Kernel-side weight: taps concatenated along the contraction axis, with the
    # BN scale (and any extra factor, e.g. 1/9 for the pool branch) folded in.
    K = max(kh, kw)
    taps = [w_oihw[:, :, t, 0] if kh > 1 else w_oihw[:, :, 0, t] for t in range(K)]
    w_mat = jnp.concatenate(taps, axis=1)                # (Cout, K*Cin)
    w_mat = (extra_scale * bn_scale)[:, None] * w_mat

    return dict(
        w_mat=w_mat, shift=bn_shift.reshape(cout, 1),
        # reference-only fields:
        w_oihw=w_oihw, bn_scale=bn_scale, bn_shift=bn_shift,
        pad=((kh // 2, kh // 2), (kw // 2, kw // 2)),
    )


def init_inception_c(key, in_channels, channels_7x7, base_branch_channels):
    c7, base = channels_7x7, base_branch_channels
    dims = {
        'branch1x1':      (in_channels, base),
        'branch7x7_1':    (in_channels, c7),
        'branch7x7_2':    (c7, c7),
        'branch7x7_3':    (c7, base),
        'branch7x7dbl_1': (in_channels, c7),
        'branch7x7dbl_2': (c7, c7),
        'branch7x7dbl_3': (c7, c7),
        'branch7x7dbl_4': (c7, c7),
        'branch7x7dbl_5': (c7, base),
        'branch_pool':    (in_channels, base),
    }
    keys = jax.random.split(key, len(_LAYERS))
    layers = {}
    for k, (name, axis, K) in zip(keys, _LAYERS):
        cin, cout = dims[name]
        kh, kw = (1, 1) if axis is None else ((1, K) if axis == 'w' else (K, 1))
        extra = (1.0 / 9.0) if name == 'branch_pool' else 1.0
        layers[name] = _init_basic_conv2d(k, cin, cout, kh, kw, extra_scale=extra)
    return {'layers': layers, 'base': base, 'c7': c7}


# ----------------------------- pure-JAX reference -----------------------------

def _ref_apply(p, x):
    y = jax.lax.conv_general_dilated(
        x, p['w_oihw'], (1, 1), p['pad'],
        dimension_numbers=('NCHW', 'OIHW', 'NCHW'),
        precision=jax.lax.Precision.HIGHEST)
    y = y * p['bn_scale'].reshape(1, -1, 1, 1) + p['bn_shift'].reshape(1, -1, 1, 1)
    return jnp.maximum(y, 0.0)


def inception_c_reference(params, x):
    L = params['layers']
    b1 = _ref_apply(L['branch1x1'], x)
    b7 = _ref_apply(L['branch7x7_1'], x)
    b7 = _ref_apply(L['branch7x7_2'], b7)
    b7 = _ref_apply(L['branch7x7_3'], b7)
    bd = _ref_apply(L['branch7x7dbl_1'], x)
    for nm in ('branch7x7dbl_2', 'branch7x7dbl_3', 'branch7x7dbl_4', 'branch7x7dbl_5'):
        bd = _ref_apply(L[nm], bd)
    s = jax.lax.reduce_window(x, 0.0, jax.lax.add, (1, 1, 3, 3), (1, 1, 1, 1),
                              ((0, 0), (0, 0), (1, 1), (1, 1)))
    bp = _ref_apply(L['branch_pool'], s / 9.0)
    return jnp.concatenate([b1, b7, bd, bp], axis=1)


# ----------------------------- main -----------------------------

if __name__ == "__main__":
    key = jax.random.PRNGKey(0)
    kx, kp = jax.random.split(key)

    N, Cin, H, W = 2, 16, 16, 16
    channels_7x7, base_branch_channels = 8, 8

    x = jax.random.normal(kx, (N, Cin, H, W), jnp.float32)   # NCHW like PyTorch
    params = init_inception_c(kp, Cin, channels_7x7, base_branch_channels)

    out = jax.block_until_ready(inception_c_forward(params, x))
    assert out.shape == (N, 4 * base_branch_channels, H, W), out.shape

    ref = jax.block_until_ready(inception_c_reference(params, x))
    max_err = float(jnp.max(jnp.abs(out - ref)))
    assert max_err < 1e-2, f"max abs error vs reference: {max_err}"

    print("KERNEL_OK")
</pallas_src>

<mosaic_0001>
module attributes {stable_mosaic.version = 11 : i64} {
  func.func @kernel(%arg0: i32, %arg1: memref<1x16x256xf32, #tpu.memory_space<vmem>>, %arg2: memref<8x16xf32, #tpu.memory_space<vmem>>, %arg3: memref<8x1xf32, #tpu.memory_space<vmem>>, %arg4: memref<8x16xf32, #tpu.memory_space<vmem>>, %arg5: memref<8x1xf32, #tpu.memory_space<vmem>>, %arg6: memref<8x56xf32, #tpu.memory_space<vmem>>, %arg7: memref<8x1xf32, #tpu.memory_space<vmem>>, %arg8: memref<8x56xf32, #tpu.memory_space<vmem>>, %arg9: memref<8x1xf32, #tpu.memory_space<vmem>>, %arg10: memref<8x16xf32, #tpu.memory_space<vmem>>, %arg11: memref<8x1xf32, #tpu.memory_space<vmem>>, %arg12: memref<8x56xf32, #tpu.memory_space<vmem>>, %arg13: memref<8x1xf32, #tpu.memory_space<vmem>>, %arg14: memref<8x56xf32, #tpu.memory_space<vmem>>, %arg15: memref<8x1xf32, #tpu.memory_space<vmem>>, %arg16: memref<8x56xf32, #tpu.memory_space<vmem>>, %arg17: memref<8x1xf32, #tpu.memory_space<vmem>>, %arg18: memref<8x56xf32, #tpu.memory_space<vmem>>, %arg19: memref<8x1xf32, #tpu.memory_space<vmem>>, %arg20: memref<8x16xf32, #tpu.memory_space<vmem>>, %arg21: memref<8x1xf32, #tpu.memory_space<vmem>>, %arg22: memref<1x32x256xf32, #tpu.memory_space<vmem>>) attributes {dimension_semantics = [#tpu.dimension_semantics<parallel>], iteration_bounds = array<i64: 2>, scalar_prefetch = 0 : i64, scratch_operands = 0 : i64, tpu.core_type = #tpu.core_type<tc>, window_params = [{transform_indices = @transform_0, window_bounds = array<i64: 1, 16, 256>}, {pipeline_mode = #tpu.pipeline_mode<synchronous>, transform_indices = @transform_1, window_bounds = array<i64: 8, 16>}, {pipeline_mode = #tpu.pipeline_mode<synchronous>, transform_indices = @transform_2, window_bounds = array<i64: 8, 1>}, {pipeline_mode = #tpu.pipeline_mode<synchronous>, transform_indices = @transform_3, window_bounds = array<i64: 8, 16>}, {pipeline_mode = #tpu.pipeline_mode<synchronous>, transform_indices = @transform_4, window_bounds = array<i64: 8, 1>}, {pipeline_mode = #tpu.pipeline_mode<synchronous>, transform_indices = @transform_5, window_bounds = array<i64: 8, 56>}, {pipeline_mode = #tpu.pipeline_mode<synchronous>, transform_indices = @transform_6, window_bounds = array<i64: 8, 1>}, {pipeline_mode = #tpu.pipeline_mode<synchronous>, transform_indices = @transform_7, window_bounds = array<i64: 8, 56>}, {pipeline_mode = #tpu.pipeline_mode<synchronous>, transform_indices = @transform_8, window_bounds = array<i64: 8, 1>}, {pipeline_mode = #tpu.pipeline_mode<synchronous>, transform_indices = @transform_9, window_bounds = array<i64: 8, 16>}, {pipeline_mode = #tpu.pipeline_mode<synchronous>, transform_indices = @transform_10, window_bounds = array<i64: 8, 1>}, {pipeline_mode = #tpu.pipeline_mode<synchronous>, transform_indices = @transform_11, window_bounds = array<i64: 8, 56>}, {pipeline_mode = #tpu.pipeline_mode<synchronous>, transform_indices = @transform_12, window_bounds = array<i64: 8, 1>}, {pipeline_mode = #tpu.pipeline_mode<synchronous>, transform_indices = @transform_13, window_bounds = array<i64: 8, 56>}, {pipeline_mode = #tpu.pipeline_mode<synchronous>, transform_indices = @transform_14, window_bounds = array<i64: 8, 1>}, {pipeline_mode = #tpu.pipeline_mode<synchronous>, transform_indices = @transform_15, window_bounds = array<i64: 8, 56>}, {pipeline_mode = #tpu.pipeline_mode<synchronous>, transform_indices = @transform_16, window_bounds = array<i64: 8, 1>}, {pipeline_mode = #tpu.pipeline_mode<synchronous>, transform_indices = @transform_17, window_bounds = array<i64: 8, 56>}, {pipeline_mode = #tpu.pipeline_mode<synchronous>, transform_indices = @transform_18, window_bounds = array<i64: 8, 1>}, {pipeline_mode = #tpu.pipeline_mode<synchronous>, transform_indices = @transform_19, window_bounds = array<i64: 8, 16>}, {pipeline_mode = #tpu.pipeline_mode<synchronous>, transform_indices = @transform_20, window_bounds = array<i64: 8, 1>}, {transform_indices = @transform_21, window_bounds = array<i64: 1, 32, 256>}]} {
    %0 = tpu.iota {dimensions = array<i32: 1>} : vector<1x256xi32>
    %c16_i32 = arith.constant 16 : i32
    %c0_i32 = arith.constant 0 : i32
    %1 = arith.cmpi eq, %c16_i32, %c0_i32 : i32
    %c1_i32 = arith.constant 1 : i32
    %2 = arith.select %1, %c1_i32, %c16_i32 : i32
    %3 = vector.broadcast %2 : i32 to vector<1x256xi32>
    %4 = arith.remsi %0, %3 : vector<1x256xi32>
    %c0_i32_0 = arith.constant 0 : i32
    %5 = vector.broadcast %c0_i32_0 : i32 to vector<1x256xi32>
    %6 = arith.cmpi ne, %4, %5 : vector<1x256xi32>
    %c0_i32_1 = arith.constant 0 : i32
    %7 = vector.broadcast %c0_i32_1 : i32 to vector<1x256xi32>
    %8 = arith.cmpi slt, %4, %7 : vector<1x256xi32>
    %c0_i32_2 = arith.constant 0 : i32
    %9 = arith.cmpi slt, %2, %c0_i32_2 : i32
    %10 = vector.broadcast %9 : i1 to vector<1x256xi1>
    %11 = vector.broadcast %10 : vector<1x256xi1> to vector<1x256xi1>
    %12 = arith.xori %8, %11 : vector<1x256xi1>
    %13 = arith.andi %12, %6 : vector<1x256xi1>
    %14 = vector.broadcast %2 : i32 to vector<1x256xi32>
    %15 = arith.addi %4, %14 : vector<1x256xi32>
    %16 = arith.select %13, %15, %4 : vector<1x256xi1>, vector<1x256xi32>
    %c0 = arith.constant 0 : index
    %c0_3 = arith.constant 0 : index
    %c0_4 = arith.constant 0 : index
    %17 = vector.load %arg1[%c0, %c0_3, %c0_4] : memref<1x16x256xf32, #tpu.memory_space<vmem>>, vector<1x16x256xf32>
    %18 = vector.shape_cast %17 : vector<1x16x256xf32> to vector<16x256xf32>
    %c0_5 = arith.constant 0 : index
    %c0_6 = arith.constant 0 : index
    %19 = vector.load %arg2[%c0_5, %c0_6] : memref<8x16xf32, #tpu.memory_space<vmem>>, vector<8x16xf32>
    %c0_7 = arith.constant 0 : index
    %c0_8 = arith.constant 0 : index
    %20 = vector.load %arg3[%c0_7, %c0_8] : memref<8x1xf32, #tpu.memory_space<vmem>>, vector<8x1xf32>
    %cst = arith.constant dense<0.000000e+00> : vector<8x256xf32>
    %21 = tpu.matmul %19, %18, %cst {dimension_numbers = #tpu.dot_dimension_numbers<[1], [0], [0], [1], [0, 0, 1, 1], [], []>} : vector<8x16xf32>, vector<16x256xf32>, vector<8x256xf32> -> vector<8x256xf32>
    %22 = vector.broadcast %20 : vector<8x1xf32> to vector<8x256xf32>
    %23 = arith.addf %21, %22 : vector<8x256xf32>
    %cst_9 = arith.constant 0.000000e+00 : f32
    %24 = vector.broadcast %cst_9 : f32 to vector<8x256xf32>
    %25 = arith.maximumf %23, %24 : vector<8x256xf32>
    %c0_10 = arith.constant 0 : index
    %c0_11 = arith.constant 0 : index
    %26 = vector.load %arg4[%c0_10, %c0_11] : memref<8x16xf32, #tpu.memory_space<vmem>>, vector<8x16xf32>
    %c0_12 = arith.constant 0 : index
    %c0_13 = arith.constant 0 : index
    %27 = vector.load %arg5[%c0_12, %c0_13] : memref<8x1xf32, #tpu.memory_space<vmem>>, vector<8x1xf32>
    %cst_14 = arith.constant dense<0.000000e+00> : vector<8x256xf32>
    %28 = tpu.matmul %26, %18, %cst_14 {dimension_numbers = #tpu.dot_dimension_numbers<[1], [0], [0], [1], [0, 0, 1, 1], [], []>} : vector<8x16xf32>, vector<16x256xf32>, vector<8x256xf32> -> vector<8x256xf32>
    %29 = vector.broadcast %27 : vector<8x1xf32> to vector<8x256xf32>
    %30 = arith.addf %28, %29 : vector<8x256xf32>
    %cst_15 = arith.constant 0.000000e+00 : f32
    %31 = vector.broadcast %cst_15 : f32 to vector<8x256xf32>
    %32 = arith.maximumf %30, %31 : vector<8x256xf32>
    %c0_16 = arith.constant 0 : index
    %c0_17 = arith.constant 0 : index
    %33 = vector.load %arg6[%c0_16, %c0_17] : memref<8x56xf32, #tpu.memory_space<vmem>>, vector<8x56xf32>
    %c0_18 = arith.constant 0 : index
    %c0_19 = arith.constant 0 : index
    %34 = vector.load %arg7[%c0_18, %c0_19] : memref<8x1xf32, #tpu.memory_space<vmem>>, vector<8x1xf32>
    %cst_20 = arith.constant 0.000000e+00 : f32
    %35 = vector.broadcast %cst_20 : f32 to vector<8x3xf32>
    %36 = vector.extract_strided_slice %32 {offsets = [0, 0], sizes = [8, 253], strides = [1, 1]} : vector<8x256xf32> to vector<8x253xf32>
    %37 = tpu.concatenate %35, %36 in 1 : vector<8x3xf32>, vector<8x253xf32> -> vector<8x256xf32>
    %c-3_i32 = arith.constant -3 : i32
    %38 = vector.broadcast %c-3_i32 : i32 to vector<1x256xi32>
    %39 = arith.addi %16, %38 : vector<1x256xi32>
    %c0_i32_21 = arith.constant 0 : i32
    %40 = vector.broadcast %c0_i32_21 : i32 to vector<1x256xi32>
    %41 = arith.cmpi sge, %39, %40 : vector<1x256xi32>
    %c-3_i32_22 = arith.constant -3 : i32
    %42 = vector.broadcast %c-3_i32_22 : i32 to vector<1x256xi32>
    %43 = arith.addi %16, %42 : vector<1x256xi32>
    %c16_i32_23 = arith.constant 16 : i32
    %44 = vector.broadcast %c16_i32_23 : i32 to vector<1x256xi32>
    %45 = arith.cmpi slt, %43, %44 : vector<1x256xi32>
    %46 = arith.andi %41, %45 : vector<1x256xi1>
    %cst_24 = arith.constant 0.000000e+00 : f32
    %47 = vector.shape_cast %46 : vector<1x256xi1> to vector<1x256xi1>
    %48 = vector.broadcast %47 : vector<1x256xi1> to vector<8x256xi1>
    %49 = vector.broadcast %cst_24 : f32 to vector<8x256xf32>
    %50 = arith.select %48, %37, %49 : vector<8x256xi1>, vector<8x256xf32>
    %cst_25 = arith.constant 0.000000e+00 : f32
    %51 = vector.broadcast %cst_25 : f32 to vector<8x2xf32>
    %52 = vector.extract_strided_slice %32 {offsets = [0, 0], sizes = [8, 254], strides = [1, 1]} : vector<8x256xf32> to vector<8x254xf32>
    %53 = tpu.concatenate %51, %52 in 1 : vector<8x2xf32>, vector<8x254xf32> -> vector<8x256xf32>
    %c-2_i32 = arith.constant -2 : i32
    %54 = vector.broadcast %c-2_i32 : i32 to vector<1x256xi32>
    %55 = arith.addi %16, %54 : vector<1x256xi32>
    %c0_i32_26 = arith.constant 0 : i32
    %56 = vector.broadcast %c0_i32_26 : i32 to vector<1x256xi32>
    %57 = arith.cmpi sge, %55, %56 : vector<1x256xi32>
    %c-2_i32_27 = arith.constant -2 : i32
    %58 = vector.broadcast %c-2_i32_27 : i32 to vector<1x256xi32>
    %59 = arith.addi %16, %58 : vector<1x256xi32>
    %c16_i32_28 = arith.constant 16 : i32
    %60 = vector.broadcast %c16_i32_28 : i32 to vector<1x256xi32>
    %61 = arith.cmpi slt, %59, %60 : vector<1x256xi32>
    %62 = arith.andi %57, %61 : vector<1x256xi1>
    %cst_29 = arith.constant 0.000000e+00 : f32
    %63 = vector.shape_cast %62 : vector<1x256xi1> to vector<1x256xi1>
    %64 = vector.broadcast %63 : vector<1x256xi1> to vector<8x256xi1>
    %65 = vector.broadcast %cst_29 : f32 to vector<8x256xf32>
    %66 = arith.select %64, %53, %65 : vector<8x256xi1>, vector<8x256xf32>
    %cst_30 = arith.constant 0.000000e+00 : f32
    %67 = vector.broadcast %cst_30 : f32 to vector<8x1xf32>
    %68 = vector.extract_strided_slice %32 {offsets = [0, 0], sizes = [8, 255], strides = [1, 1]} : vector<8x256xf32> to vector<8x255xf32>
    %69 = tpu.concatenate %67, %68 in 1 : vector<8x1xf32>, vector<8x255xf32> -> vector<8x256xf32>
    %c-1_i32 = arith.constant -1 : i32
    %70 = vector.broadcast %c-1_i32 : i32 to vector<1x256xi32>
    %71 = arith.addi %16, %70 : vector<1x256xi32>
    %c0_i32_31 = arith.constant 0 : i32
    %72 = vector.broadcast %c0_i32_31 : i32 to vector<1x256xi32>
    %73 = arith.cmpi sge, %71, %72 : vector<1x256xi32>
    %c-1_i32_32 = arith.constant -1 : i32
    %74 = vector.broadcast %c-1_i32_32 : i32 to vector<1x256xi32>
    %75 = arith.addi %16, %74 : vector<1x256xi32>
    %c16_i32_33 = arith.constant 16 : i32
    %76 = vector.broadcast %c16_i32_33 : i32 to vector<1x256xi32>
    %77 = arith.cmpi slt, %75, %76 : vector<1x256xi32>
    %78 = arith.andi %73, %77 : vector<1x256xi1>
    %cst_34 = arith.constant 0.000000e+00 : f32
    %79 = vector.shape_cast %78 : vector<1x256xi1> to vector<1x256xi1>
    %80 = vector.broadcast %79 : vector<1x256xi1> to vector<8x256xi1>
    %81 = vector.broadcast %cst_34 : f32 to vector<8x256xf32>
    %82 = arith.select %80, %69, %81 : vector<8x256xi1>, vector<8x256xf32>
    %cst_35 = arith.constant 0.000000e+00 : f32
    %83 = vector.broadcast %cst_35 : f32 to vector<8x1xf32>
    %84 = vector.extract_strided_slice %32 {offsets = [0, 1], sizes = [8, 255], strides = [1, 1]} : vector<8x256xf32> to vector<8x255xf32>
    %85 = tpu.concatenate %84, %83 in 1 : vector<8x255xf32>, vector<8x1xf32> -> vector<8x256xf32>
    %c1_i32_36 = arith.constant 1 : i32
    %86 = vector.broadcast %c1_i32_36 : i32 to vector<1x256xi32>
    %87 = arith.addi %16, %86 : vector<1x256xi32>
    %c0_i32_37 = arith.constant 0 : i32
    %88 = vector.broadcast %c0_i32_37 : i32 to vector<1x256xi32>
    %89 = arith.cmpi sge, %87, %88 : vector<1x256xi32>
    %c1_i32_38 = arith.constant 1 : i32
    %90 = vector.broadcast %c1_i32_38 : i32 to vector<1x256xi32>
    %91 = arith.addi %16, %90 : vector<1x256xi32>
    %c16_i32_39 = arith.constant 16 : i32
    %92 = vector.broadcast %c16_i32_39 : i32 to vector<1x256xi32>
    %93 = arith.cmpi slt, %91, %92 : vector<1x256xi32>
    %94 = arith.andi %89, %93 : vector<1x256xi1>
    %cst_40 = arith.constant 0.000000e+00 : f32
    %95 = vector.shape_cast %94 : vector<1x256xi1> to vector<1x256xi1>
    %96 = vector.broadcast %95 : vector<1x256xi1> to vector<8x256xi1>
    %97 = vector.broadcast %cst_40 : f32 to vector<8x256xf32>
    %98 = arith.select %96, %85, %97 : vector<8x256xi1>, vector<8x256xf32>
    %cst_41 = arith.constant 0.000000e+00 : f32
    %99 = vector.broadcast %cst_41 : f32 to vector<8x2xf32>
    %100 = vector.extract_strided_slice %32 {offsets = [0, 2], sizes = [8, 254], strides = [1, 1]} : vector<8x256xf32> to vector<8x254xf32>
    %101 = tpu.concatenate %100, %99 in 1 : vector<8x254xf32>, vector<8x2xf32> -> vector<8x256xf32>
    %c2_i32 = arith.constant 2 : i32
    %102 = vector.broadcast %c2_i32 : i32 to vector<1x256xi32>
    %103 = arith.addi %16, %102 : vector<1x256xi32>
    %c0_i32_42 = arith.constant 0 : i32
    %104 = vector.broadcast %c0_i32_42 : i32 to vector<1x256xi32>
    %105 = arith.cmpi sge, %103, %104 : vector<1x256xi32>
    %c2_i32_43 = arith.constant 2 : i32
    %106 = vector.broadcast %c2_i32_43 : i32 to vector<1x256xi32>
    %107 = arith.addi %16, %106 : vector<1x256xi32>
    %c16_i32_44 = arith.constant 16 : i32
    %108 = vector.broadcast %c16_i32_44 : i32 to vector<1x256xi32>
    %109 = arith.cmpi slt, %107, %108 : vector<1x256xi32>
    %110 = arith.andi %105, %109 : vector<1x256xi1>
    %cst_45 = arith.constant 0.000000e+00 : f32
    %111 = vector.shape_cast %110 : vector<1x256xi1> to vector<1x256xi1>
    %112 = vector.broadcast %111 : vector<1x256xi1> to vector<8x256xi1>
    %113 = vector.broadcast %cst_45 : f32 to vector<8x256xf32>
    %114 = arith.select %112, %101, %113 : vector<8x256xi1>, vector<8x256xf32>
    %cst_46 = arith.constant 0.000000e+00 : f32
    %115 = vector.broadcast %cst_46 : f32 to vector<8x3xf32>
    %116 = vector.extract_strided_slice %32 {offsets = [0, 3], sizes = [8, 253], strides = [1, 1]} : vector<8x256xf32> to vector<8x253xf32>
    %117 = tpu.concatenate %116, %115 in 1 : vector<8x253xf32>, vector<8x3xf32> -> vector<8x256xf32>
    %c3_i32 = arith.constant 3 : i32
    %118 = vector.broadcast %c3_i32 : i32 to vector<1x256xi32>
    %119 = arith.addi %16, %118 : vector<1x256xi32>
    %c0_i32_47 = arith.constant 0 : i32
    %120 = vector.broadcast %c0_i32_47 : i32 to vector<1x256xi32>
    %121 = arith.cmpi sge, %119, %120 : vector<1x256xi32>
    %c3_i32_48 = arith.constant 3 : i32
    %122 = vector.broadcast %c3_i32_48 : i32 to vector<1x256xi32>
    %123 = arith.addi %16, %122 : vector<1x256xi32>
    %c16_i32_49 = arith.constant 16 : i32
    %124 = vector.broadcast %c16_i32_49 : i32 to vector<1x256xi32>
    %125 = arith.cmpi slt, %123, %124 : vector<1x256xi32>
    %126 = arith.andi %121, %125 : vector<1x256xi1>
    %cst_50 = arith.constant 0.000000e+00 : f32
    %127 = vector.shape_cast %126 : vector<1x256xi1> to vector<1x256xi1>
    %128 = vector.broadcast %127 : vector<1x256xi1> to vector<8x256xi1>
    %129 = vector.broadcast %cst_50 : f32 to vector<8x256xf32>
    %130 = arith.select %128, %117, %129 : vector<8x256xi1>, vector<8x256xf32>
    %131 = tpu.concatenate %50, %66, %82, %32, %98, %114, %130 in 0 : vector<8x256xf32>, vector<8x256xf32>, vector<8x256xf32>, vector<8x256xf32>, vector<8x256xf32>, vector<8x256xf32>, vector<8x256xf32> -> vector<56x256xf32>
    %cst_51 = arith.constant dense<0.000000e+00> : vector<8x256xf32>
    %132 = tpu.matmul %33, %131, %cst_51 {dimension_numbers = #tpu.dot_dimension_numbers<[1], [0], [0], [1], [0, 0, 1, 1], [], []>} : vector<8x56xf32>, vector<56x256xf32>, vector<8x256xf32> -> vector<8x256xf32>
    %133 = vector.broadcast %34 : vector<8x1xf32> to vector<8x256xf32>
    %134 = arith.addf %132, %133 : vector<8x256xf32>
    %cst_52 = arith.constant 0.000000e+00 : f32
    %135 = vector.broadcast %cst_52 : f32 to vector<8x256xf32>
    %136 = arith.maximumf %134, %135 : vector<8x256xf32>
    %c0_53 = arith.constant 0 : index
    %c0_54 = arith.constant 0 : index
    %137 = vector.load %arg8[%c0_53, %c0_54] : memref<8x56xf32, #tpu.memory_space<vmem>>, vector<8x56xf32>
    %c0_55 = arith.constant 0 : index
    %c0_56 = arith.constant 0 : index
    %138 = vector.load %arg9[%c0_55, %c0_56] : memref<8x1xf32, #tpu.memory_space<vmem>>, vector<8x1xf32>
    %cst_57 = arith.constant 0.000000e+00 : f32
    %139 = vector.broadcast %cst_57 : f32 to vector<8x48xf32>
    %140 = vector.extract_strided_slice %136 {offsets = [0, 0], sizes = [8, 208], strides = [1, 1]} : vector<8x256xf32> to vector<8x208xf32>
    %141 = tpu.concatenate %139, %140 in 1 : vector<8x48xf32>, vector<8x208xf32> -> vector<8x256xf32>
    %cst_58 = arith.constant 0.000000e+00 : f32
    %142 = vector.broadcast %cst_58 : f32 to vector<8x32xf32>
    %143 = vector.extract_strided_slice %136 {offsets = [0, 0], sizes = [8, 224], strides = [1, 1]} : vector<8x256xf32> to vector<8x224xf32>
    %144 = tpu.concatenate %142, %143 in 1 : vector<8x32xf32>, vector<8x224xf32> -> vector<8x256xf32>
    %cst_59 = arith.constant 0.000000e+00 : f32
    %145 = vector.broadcast %cst_59 : f32 to vector<8x16xf32>
    %146 = vector.extract_strided_slice %136 {offsets = [0, 0], sizes = [8, 240], strides = [1, 1]} : vector<8x256xf32> to vector<8x240xf32>
    %147 = tpu.concatenate %145, %146 in 1 : vector<8x16xf32>, vector<8x240xf32> -> vector<8x256xf32>
    %cst_60 = arith.constant 0.000000e+00 : f32
    %148 = vector.broadcast %cst_60 : f32 to vector<8x16xf32>
    %149 = vector.extract_strided_slice %136 {offsets = [0, 16], sizes = [8, 240], strides = [1, 1]} : vector<8x256xf32> to vector<8x240xf32>
    %150 = tpu.concatenate %149, %148 in 1 : vector<8x240xf32>, vector<8x16xf32> -> vector<8x256xf32>
    %cst_61 = arith.constant 0.000000e+00 : f32
    %151 = vector.broadcast %cst_61 : f32 to vector<8x32xf32>
    %152 = vector.extract_strided_slice %136 {offsets = [0, 32], sizes = [8, 224], strides = [1, 1]} : vector<8x256xf32> to vector<8x224xf32>
    %153 = tpu.concatenate %152, %151 in 1 : vector<8x224xf32>, vector<8x32xf32> -> vector<8x256xf32>
    %cst_62 = arith.constant 0.000000e+00 : f32
    %154 = vector.broadcast %cst_62 : f32 to vector<8x48xf32>
    %155 = vector.extract_strided_slice %136 {offsets = [0, 48], sizes = [8, 208], strides = [1, 1]} : vector<8x256xf32> to vector<8x208xf32>
    %156 = tpu.concatenate %155, %154 in 1 : vector<8x208xf32>, vector<8x48xf32> -> vector<8x256xf32>
    %157 = tpu.concatenate %141, %144, %147, %136, %150, %153, %156 in 0 : vector<8x256xf32>, vector<8x256xf32>, vector<8x256xf32>, vector<8x256xf32>, vector<8x256xf32>, vector<8x256xf32>, vector<8x256xf32> -> vector<56x256xf32>
    %cst_63 = arith.constant dense<0.000000e+00> : vector<8x256xf32>
    %158 = tpu.matmul %137, %157, %cst_63 {dimension_numbers = #tpu.dot_dimension_numbers<[1], [0], [0], [1], [0, 0, 1, 1], [], []>} : vector<8x56xf32>, vector<56x256xf32>, vector<8x256xf32> -> vector<8x256xf32>
    %159 = vector.broadcast %138 : vector<8x1xf32> to vector<8x256xf32>
    %160 = arith.addf %158, %159 : vector<8x256xf32>
    %cst_64 = arith.constant 0.000000e+00 : f32
    %161 = vector.broadcast %cst_64 : f32 to vector<8x256xf32>
    %162 = arith.maximumf %160, %161 : vector<8x256xf32>
    %c0_65 = arith.constant 0 : index
    %c0_66 = arith.constant 0 : index
    %163 = vector.load %arg10[%c0_65, %c0_66] : memref<8x16xf32, #tpu.memory_space<vmem>>, vector<8x16xf32>
    %c0_67 = arith.constant 0 : index
    %c0_68 = arith.constant 0 : index
    %164 = vector.load %arg11[%c0_67, %c0_68] : memref<8x1xf32, #tpu.memory_space<vmem>>, vector<8x1xf32>
    %cst_69 = arith.constant dense<0.000000e+00> : vector<8x256xf32>
    %165 = tpu.matmul %163, %18, %cst_69 {dimension_numbers = #tpu.dot_dimension_numbers<[1], [0], [0], [1], [0, 0, 1, 1], [], []>} : vector<8x16xf32>, vector<16x256xf32>, vector<8x256xf32> -> vector<8x256xf32>
    %166 = vector.broadcast %164 : vector<8x1xf32> to vector<8x256xf32>
    %167 = arith.addf %165, %166 : vector<8x256xf32>
    %cst_70 = arith.constant 0.000000e+00 : f32
    %168 = vector.broadcast %cst_70 : f32 to vector<8x256xf32>
    %169 = arith.maximumf %167, %168 : vector<8x256xf32>
    %c0_71 = arith.constant 0 : index
    %c0_72 = arith.constant 0 : index
    %170 = vector.load %arg12[%c0_71, %c0_72] : memref<8x56xf32, #tpu.memory_space<vmem>>, vector<8x56xf32>
    %c0_73 = arith.constant 0 : index
    %c0_74 = arith.constant 0 : index
    %171 = vector.load %arg13[%c0_73, %c0_74] : memref<8x1xf32, #tpu.memory_space<vmem>>, vector<8x1xf32>
    %cst_75 = arith.constant 0.000000e+00 : f32
    %172 = vector.broadcast %cst_75 : f32 to vector<8x48xf32>
    %173 = vector.extract_strided_slice %169 {offsets = [0, 0], sizes = [8, 208], strides = [1, 1]} : vector<8x256xf32> to vector<8x208xf32>
    %174 = tpu.concatenate %172, %173 in 1 : vector<8x48xf32>, vector<8x208xf32> -> vector<8x256xf32>
    %cst_76 = arith.constant 0.000000e+00 : f32
    %175 = vector.broadcast %cst_76 : f32 to vector<8x32xf32>
    %176 = vector.extract_strided_slice %169 {offsets = [0, 0], sizes = [8, 224], strides = [1, 1]} : vector<8x256xf32> to vector<8x224xf32>
    %177 = tpu.concatenate %175, %176 in 1 : vector<8x32xf32>, vector<8x224xf32> -> vector<8x256xf32>
    %cst_77 = arith.constant 0.000000e+00 : f32
    %178 = vector.broadcast %cst_77 : f32 to vector<8x16xf32>
    %179 = vector.extract_strided_slice %169 {offsets = [0, 0], sizes = [8, 240], strides = [1, 1]} : vector<8x256xf32> to vector<8x240xf32>
    %180 = tpu.concatenate %178, %179 in 1 : vector<8x16xf32>, vector<8x240xf32> -> vector<8x256xf32>
    %cst_78 = arith.constant 0.000000e+00 : f32
    %181 = vector.broadcast %cst_78 : f32 to vector<8x16xf32>
    %182 = vector.extract_strided_slice %169 {offsets = [0, 16], sizes = [8, 240], strides = [1, 1]} : vector<8x256xf32> to vector<8x240xf32>
    %183 = tpu.concatenate %182, %181 in 1 : vector<8x240xf32>, vector<8x16xf32> -> vector<8x256xf32>
    %cst_79 = arith.constant 0.000000e+00 : f32
    %184 = vector.broadcast %cst_79 : f32 to vector<8x32xf32>
    %185 = vector.extract_strided_slice %169 {offsets = [0, 32], sizes = [8, 224], strides = [1, 1]} : vector<8x256xf32> to vector<8x224xf32>
    %186 = tpu.concatenate %185, %184 in 1 : vector<8x224xf32>, vector<8x32xf32> -> vector<8x256xf32>
    %cst_80 = arith.constant 0.000000e+00 : f32
    %187 = vector.broadcast %cst_80 : f32 to vector<8x48xf32>
    %188 = vector.extract_strided_slice %169 {offsets = [0, 48], sizes = [8, 208], strides = [1, 1]} : vector<8x256xf32> to vector<8x208xf32>
    %189 = tpu.concatenate %188, %187 in 1 : vector<8x208xf32>, vector<8x48xf32> -> vector<8x256xf32>
    %190 = tpu.concatenate %174, %177, %180, %169, %183, %186, %189 in 0 : vector<8x256xf32>, vector<8x256xf32>, vector<8x256xf32>, vector<8x256xf32>, vector<8x256xf32>, vector<8x256xf32>, vector<8x256xf32> -> vector<56x256xf32>
    %cst_81 = arith.constant dense<0.000000e+00> : vector<8x256xf32>
    %191 = tpu.matmul %170, %190, %cst_81 {dimension_numbers = #tpu.dot_dimension_numbers<[1], [0], [0], [1], [0, 0, 1, 1], [], []>} : vector<8x56xf32>, vector<56x256xf32>, vector<8x256xf32> -> vector<8x256xf32>
    %192 = vector.broadcast %171 : vector<8x1xf32> to vector<8x256xf32>
    %193 = arith.addf %191, %192 : vector<8x256xf32>
    %cst_82 = arith.constant 0.000000e+00 : f32
    %194 = vector.broadcast %cst_82 : f32 to vector<8x256xf32>
    %195 = arith.maximumf %193, %194 : vector<8x256xf32>
    %c0_83 = arith.constant 0 : index
    %c0_84 = arith.constant 0 : index
    %196 = vector.load %arg14[%c0_83, %c0_84] : memref<8x56xf32, #tpu.memory_space<vmem>>, vector<8x56xf32>
    %c0_85 = arith.constant 0 : index
    %c0_86 = arith.constant 0 : index
    %197 = vector.load %arg15[%c0_85, %c0_86] : memref<8x1xf32, #tpu.memory_space<vmem>>, vector<8x1xf32>
    %cst_87 = arith.constant 0.000000e+00 : f32
    %198 = vector.broadcast %cst_87 : f32 to vector<8x3xf32>
    %199 = vector.extract_strided_slice %195 {offsets = [0, 0], sizes = [8, 253], strides = [1, 1]} : vector<8x256xf32> to vector<8x253xf32>
    %200 = tpu.concatenate %198, %199 in 1 : vector<8x3xf32>, vector<8x253xf32> -> vector<8x256xf32>
    %c-3_i32_88 = arith.constant -3 : i32
    %201 = vector.broadcast %c-3_i32_88 : i32 to vector<1x256xi32>
    %202 = arith.addi %16, %201 : vector<1x256xi32>
    %c0_i32_89 = arith.constant 0 : i32
    %203 = vector.broadcast %c0_i32_89 : i32 to vector<1x256xi32>
    %204 = arith.cmpi sge, %202, %203 : vector<1x256xi32>
    %c-3_i32_90 = arith.constant -3 : i32
    %205 = vector.broadcast %c-3_i32_90 : i32 to vector<1x256xi32>
    %206 = arith.addi %16, %205 : vector<1x256xi32>
    %c16_i32_91 = arith.constant 16 : i32
    %207 = vector.broadcast %c16_i32_91 : i32 to vector<1x256xi32>
    %208 = arith.cmpi slt, %206, %207 : vector<1x256xi32>
    %209 = arith.andi %204, %208 : vector<1x256xi1>
    %cst_92 = arith.constant 0.000000e+00 : f32
    %210 = vector.shape_cast %209 : vector<1x256xi1> to vector<1x256xi1>
    %211 = vector.broadcast %210 : vector<1x256xi1> to vector<8x256xi1>
    %212 = vector.broadcast %cst_92 : f32 to vector<8x256xf32>
    %213 = arith.select %211, %200, %212 : vector<8x256xi1>, vector<8x256xf32>
    %cst_93 = arith.constant 0.000000e+00 : f32
    %214 = vector.broadcast %cst_93 : f32 to vector<8x2xf32>
    %215 = vector.extract_strided_slice %195 {offsets = [0, 0], sizes = [8, 254], strides = [1, 1]} : vector<8x256xf32> to vector<8x254xf32>
    %216 = tpu.concatenate %214, %215 in 1 : vector<8x2xf32>, vector<8x254xf32> -> vector<8x256xf32>
    %c-2_i32_94 = arith.constant -2 : i32
    %217 = vector.broadcast %c-2_i32_94 : i32 to vector<1x256xi32>
    %218 = arith.addi %16, %217 : vector<1x256xi32>
    %c0_i32_95 = arith.constant 0 : i32
    %219 = vector.broadcast %c0_i32_95 : i32 to vector<1x256xi32>
    %220 = arith.cmpi sge, %218, %219 : vector<1x256xi32>
    %c-2_i32_96 = arith.constant -2 : i32
    %221 = vector.broadcast %c-2_i32_96 : i32 to vector<1x256xi32>
    %222 = arith.addi %16, %221 : vector<1x256xi32>
    %c16_i32_97 = arith.constant 16 : i32
    %223 = vector.broadcast %c16_i32_97 : i32 to vector<1x256xi32>
    %224 = arith.cmpi slt, %222, %223 : vector<1x256xi32>
    %225 = arith.andi %220, %224 : vector<1x256xi1>
    %cst_98 = arith.constant 0.000000e+00 : f32
    %226 = vector.shape_cast %225 : vector<1x256xi1> to vector<1x256xi1>
    %227 = vector.broadcast %226 : vector<1x256xi1> to vector<8x256xi1>
    %228 = vector.broadcast %cst_98 : f32 to vector<8x256xf32>
    %229 = arith.select %227, %216, %228 : vector<8x256xi1>, vector<8x256xf32>
    %cst_99 = arith.constant 0.000000e+00 : f32
    %230 = vector.broadcast %cst_99 : f32 to vector<8x1xf32>
    %231 = vector.extract_strided_slice %195 {offsets = [0, 0], sizes = [8, 255], strides = [1, 1]} : vector<8x256xf32> to vector<8x255xf32>
    %232 = tpu.concatenate %230, %231 in 1 : vector<8x1xf32>, vector<8x255xf32> -> vector<8x256xf32>
    %c-1_i32_100 = arith.constant -1 : i32
    %233 = vector.broadcast %c-1_i32_100 : i32 to vector<1x256xi32>
    %234 = arith.addi %16, %233 : vector<1x256xi32>
    %c0_i32_101 = arith.constant 0 : i32
    %235 = vector.broadcast %c0_i32_101 : i32 to vector<1x256xi32>
    %236 = arith.cmpi sge, %234, %235 : vector<1x256xi32>
    %c-1_i32_102 = arith.constant -1 : i32
    %237 = vector.broadcast %c-1_i32_102 : i32 to vector<1x256xi32>
    %238 = arith.addi %16, %237 : vector<1x256xi32>
    %c16_i32_103 = arith.constant 16 : i32
    %239 = vector.broadcast %c16_i32_103 : i32 to vector<1x256xi32>
    %240 = arith.cmpi slt, %238, %239 : vector<1x256xi32>
    %241 = arith.andi %236, %240 : vector<1x256xi1>
    %cst_104 = arith.constant 0.000000e+00 : f32
    %242 = vector.shape_cast %241 : vector<1x256xi1> to vector<1x256xi1>
    %243 = vector.broadcast %242 : vector<1x256xi1> to vector<8x256xi1>
    %244 = vector.broadcast %cst_104 : f32 to vector<8x256xf32>
    %245 = arith.select %243, %232, %244 : vector<8x256xi1>, vector<8x256xf32>
    %cst_105 = arith.constant 0.000000e+00 : f32
    %246 = vector.broadcast %cst_105 : f32 to vector<8x1xf32>
    %247 = vector.extract_strided_slice %195 {offsets = [0, 1], sizes = [8, 255], strides = [1, 1]} : vector<8x256xf32> to vector<8x255xf32>
    %248 = tpu.concatenate %247, %246 in 1 : vector<8x255xf32>, vector<8x1xf32> -> vector<8x256xf32>
    %c1_i32_106 = arith.constant 1 : i32
    %249 = vector.broadcast %c1_i32_106 : i32 to vector<1x256xi32>
    %250 = arith.addi %16, %249 : vector<1x256xi32>
    %c0_i32_107 = arith.constant 0 : i32
    %251 = vector.broadcast %c0_i32_107 : i32 to vector<1x256xi32>
    %252 = arith.cmpi sge, %250, %251 : vector<1x256xi32>
    %c1_i32_108 = arith.constant 1 : i32
    %253 = vector.broadcast %c1_i32_108 : i32 to vector<1x256xi32>
    %254 = arith.addi %16, %253 : vector<1x256xi32>
    %c16_i32_109 = arith.constant 16 : i32
    %255 = vector.broadcast %c16_i32_109 : i32 to vector<1x256xi32>
    %256 = arith.cmpi slt, %254, %255 : vector<1x256xi32>
    %257 = arith.andi %252, %256 : vector<1x256xi1>
    %cst_110 = arith.constant 0.000000e+00 : f32
    %258 = vector.shape_cast %257 : vector<1x256xi1> to vector<1x256xi1>
    %259 = vector.broadcast %258 : vector<1x256xi1> to vector<8x256xi1>
    %260 = vector.broadcast %cst_110 : f32 to vector<8x256xf32>
    %261 = arith.select %259, %248, %260 : vector<8x256xi1>, vector<8x256xf32>
    %cst_111 = arith.constant 0.000000e+00 : f32
    %262 = vector.broadcast %cst_111 : f32 to vector<8x2xf32>
    %263 = vector.extract_strided_slice %195 {offsets = [0, 2], sizes = [8, 254], strides = [1, 1]} : vector<8x256xf32> to vector<8x254xf32>
    %264 = tpu.concatenate %263, %262 in 1 : vector<8x254xf32>, vector<8x2xf32> -> vector<8x256xf32>
    %c2_i32_112 = arith.constant 2 : i32
    %265 = vector.broadcast %c2_i32_112 : i32 to vector<1x256xi32>
    %266 = arith.addi %16, %265 : vector<1x256xi32>
    %c0_i32_113 = arith.constant 0 : i32
    %267 = vector.broadcast %c0_i32_113 : i32 to vector<1x256xi32>
    %268 = arith.cmpi sge, %266, %267 : vector<1x256xi32>
    %c2_i32_114 = arith.constant 2 : i32
    %269 = vector.broadcast %c2_i32_114 : i32 to vector<1x256xi32>
    %270 = arith.addi %16, %269 : vector<1x256xi32>
    %c16_i32_115 = arith.constant 16 : i32
    %271 = vector.broadcast %c16_i32_115 : i32 to vector<1x256xi32>
    %272 = arith.cmpi slt, %270, %271 : vector<1x256xi32>
    %273 = arith.andi %268, %272 : vector<1x256xi1>
    %cst_116 = arith.constant 0.000000e+00 : f32
    %274 = vector.shape_cast %273 : vector<1x256xi1> to vector<1x256xi1>
    %275 = vector.broadcast %274 : vector<1x256xi1> to vector<8x256xi1>
    %276 = vector.broadcast %cst_116 : f32 to vector<8x256xf32>
    %277 = arith.select %275, %264, %276 : vector<8x256xi1>, vector<8x256xf32>
    %cst_117 = arith.constant 0.000000e+00 : f32
    %278 = vector.broadcast %cst_117 : f32 to vector<8x3xf32>
    %279 = vector.extract_strided_slice %195 {offsets = [0, 3], sizes = [8, 253], strides = [1, 1]} : vector<8x256xf32> to vector<8x253xf32>
    %280 = tpu.concatenate %279, %278 in 1 : vector<8x253xf32>, vector<8x3xf32> -> vector<8x256xf32>
    %c3_i32_118 = arith.constant 3 : i32
    %281 = vector.broadcast %c3_i32_118 : i32 to vector<1x256xi32>
    %282 = arith.addi %16, %281 : vector<1x256xi32>
    %c0_i32_119 = arith.constant 0 : i32
    %283 = vector.broadcast %c0_i32_119 : i32 to vector<1x256xi32>
    %284 = arith.cmpi sge, %282, %283 : vector<1x256xi32>
    %c3_i32_120 = arith.constant 3 : i32
    %285 = vector.broadcast %c3_i32_120 : i32 to vector<1x256xi32>
    %286 = arith.addi %16, %285 : vector<1x256xi32>
    %c16_i32_121 = arith.constant 16 : i32
    %287 = vector.broadcast %c16_i32_121 : i32 to vector<1x256xi32>
    %288 = arith.cmpi slt, %286, %287 : vector<1x256xi32>
    %289 = arith.andi %284, %288 : vector<1x256xi1>
    %cst_122 = arith.constant 0.000000e+00 : f32
    %290 = vector.shape_cast %289 : vector<1x256xi1> to vector<1x256xi1>
    %291 = vector.broadcast %290 : vector<1x256xi1> to vector<8x256xi1>
    %292 = vector.broadcast %cst_122 : f32 to vector<8x256xf32>
    %293 = arith.select %291, %280, %292 : vector<8x256xi1>, vector<8x256xf32>
    %294 = tpu.concatenate %213, %229, %245, %195, %261, %277, %293 in 0 : vector<8x256xf32>, vector<8x256xf32>, vector<8x256xf32>, vector<8x256xf32>, vector<8x256xf32>, vector<8x256xf32>, vector<8x256xf32> -> vector<56x256xf32>
    %cst_123 = arith.constant dense<0.000000e+00> : vector<8x256xf32>
    %295 = tpu.matmul %196, %294, %cst_123 {dimension_numbers = #tpu.dot_dimension_numbers<[1], [0], [0], [1], [0, 0, 1, 1], [], []>} : vector<8x56xf32>, vector<56x256xf32>, vector<8x256xf32> -> vector<8x256xf32>
    %296 = vector.broadcast %197 : vector<8x1xf32> to vector<8x256xf32>
    %297 = arith.addf %295, %296 : vector<8x256xf32>
    %cst_124 = arith.constant 0.000000e+00 : f32
    %298 = vector.broadcast %cst_124 : f32 to vector<8x256xf32>
    %299 = arith.maximumf %297, %298 : vector<8x256xf32>
    %c0_125 = arith.constant 0 : index
    %c0_126 = arith.constant 0 : index
    %300 = vector.load %arg16[%c0_125, %c0_126] : memref<8x56xf32, #tpu.memory_space<vmem>>, vector<8x56xf32>
    %c0_127 = arith.constant 0 : index
    %c0_128 = arith.constant 0 : index
    %301 = vector.load %arg17[%c0_127, %c0_128] : memref<8x1xf32, #tpu.memory_space<vmem>>, vector<8x1xf32>
    %cst_129 = arith.constant 0.000000e+00 : f32
    %302 = vector.broadcast %cst_129 : f32 to vector<8x48xf32>
    %303 = vector.extract_strided_slice %299 {offsets = [0, 0], sizes = [8, 208], strides = [1, 1]} : vector<8x256xf32> to vector<8x208xf32>
    %304 = tpu.concatenate %302, %303 in 1 : vector<8x48xf32>, vector<8x208xf32> -> vector<8x256xf32>
    %cst_130 = arith.constant 0.000000e+00 : f32
    %305 = vector.broadcast %cst_130 : f32 to vector<8x32xf32>
    %306 = vector.extract_strided_slice %299 {offsets = [0, 0], sizes = [8, 224], strides = [1, 1]} : vector<8x256xf32> to vector<8x224xf32>
    %307 = tpu.concatenate %305, %306 in 1 : vector<8x32xf32>, vector<8x224xf32> -> vector<8x256xf32>
    %cst_131 = arith.constant 0.000000e+00 : f32
    %308 = vector.broadcast %cst_131 : f32 to vector<8x16xf32>
    %309 = vector.extract_strided_slice %299 {offsets = [0, 0], sizes = [8, 240], strides = [1, 1]} : vector<8x256xf32> to vector<8x240xf32>
    %310 = tpu.concatenate %308, %309 in 1 : vector<8x16xf32>, vector<8x240xf32> -> vector<8x256xf32>
    %cst_132 = arith.constant 0.000000e+00 : f32
    %311 = vector.broadcast %cst_132 : f32 to vector<8x16xf32>
    %312 = vector.extract_strided_slice %299 {offsets = [0, 16], sizes = [8, 240], strides = [1, 1]} : vector<8x256xf32> to vector<8x240xf32>
    %313 = tpu.concatenate %312, %311 in 1 : vector<8x240xf32>, vector<8x16xf32> -> vector<8x256xf32>
    %cst_133 = arith.constant 0.000000e+00 : f32
    %314 = vector.broadcast %cst_133 : f32 to vector<8x32xf32>
    %315 = vector.extract_strided_slice %299 {offsets = [0, 32], sizes = [8, 224], strides = [1, 1]} : vector<8x256xf32> to vector<8x224xf32>
    %316 = tpu.concatenate %315, %314 in 1 : vector<8x224xf32>, vector<8x32xf32> -> vector<8x256xf32>
    %cst_134 = arith.constant 0.000000e+00 : f32
    %317 = vector.broadcast %cst_134 : f32 to vector<8x48xf32>
    %318 = vector.extract_strided_slice %299 {offsets = [0, 48], sizes = [8, 208], strides = [1, 1]} : vector<8x256xf32> to vector<8x208xf32>
    %319 = tpu.concatenate %318, %317 in 1 : vector<8x208xf32>, vector<8x48xf32> -> vector<8x256xf32>
    %320 = tpu.concatenate %304, %307, %310, %299, %313, %316, %319 in 0 : vector<8x256xf32>, vector<8x256xf32>, vector<8x256xf32>, vector<8x256xf32>, vector<8x256xf32>, vector<8x256xf32>, vector<8x256xf32> -> vector<56x256xf32>
    %cst_135 = arith.constant dense<0.000000e+00> : vector<8x256xf32>
    %321 = tpu.matmul %300, %320, %cst_135 {dimension_numbers = #tpu.dot_dimension_numbers<[1], [0], [0], [1], [0, 0, 1, 1], [], []>} : vector<8x56xf32>, vector<56x256xf32>, vector<8x256xf32> -> vector<8x256xf32>
    %322 = vector.broadcast %301 : vector<8x1xf32> to vector<8x256xf32>
    %323 = arith.addf %321, %322 : vector<8x256xf32>
    %cst_136 = arith.constant 0.000000e+00 : f32
    %324 = vector.broadcast %cst_136 : f32 to vector<8x256xf32>
    %325 = arith.maximumf %323, %324 : vector<8x256xf32>
    %c0_137 = arith.constant 0 : index
    %c0_138 = arith.constant 0 : index
    %326 = vector.load %arg18[%c0_137, %c0_138] : memref<8x56xf32, #tpu.memory_space<vmem>>, vector<8x56xf32>
    %c0_139 = arith.constant 0 : index
    %c0_140 = arith.constant 0 : index
    %327 = vector.load %arg19[%c0_139, %c0_140] : memref<8x1xf32, #tpu.memory_space<vmem>>, vector<8x1xf32>
    %cst_141 = arith.constant 0.000000e+00 : f32
    %328 = vector.broadcast %cst_141 : f32 to vector<8x3xf32>
    %329 = vector.extract_strided_slice %325 {offsets = [0, 0], sizes = [8, 253], strides = [1, 1]} : vector<8x256xf32> to vector<8x253xf32>
    %330 = tpu.concatenate %328, %329 in 1 : vector<8x3xf32>, vector<8x253xf32> -> vector<8x256xf32>
    %c-3_i32_142 = arith.constant -3 : i32
    %331 = vector.broadcast %c-3_i32_142 : i32 to vector<1x256xi32>
    %332 = arith.addi %16, %331 : vector<1x256xi32>
    %c0_i32_143 = arith.constant 0 : i32
    %333 = vector.broadcast %c0_i32_143 : i32 to vector<1x256xi32>
    %334 = arith.cmpi sge, %332, %333 : vector<1x256xi32>
    %c-3_i32_144 = arith.constant -3 : i32
    %335 = vector.broadcast %c-3_i32_144 : i32 to vector<1x256xi32>
    %336 = arith.addi %16, %335 : vector<1x256xi32>
    %c16_i32_145 = arith.constant 16 : i32
    %337 = vector.broadcast %c16_i32_145 : i32 to vector<1x256xi32>
    %338 = arith.cmpi slt, %336, %337 : vector<1x256xi32>
    %339 = arith.andi %334, %338 : vector<1x256xi1>
    %cst_146 = arith.constant 0.000000e+00 : f32
    %340 = vector.shape_cast %339 : vector<1x256xi1> to vector<1x256xi1>
    %341 = vector.broadcast %340 : vector<1x256xi1> to vector<8x256xi1>
    %342 = vector.broadcast %cst_146 : f32 to vector<8x256xf32>
    %343 = arith.select %341, %330, %342 : vector<8x256xi1>, vector<8x256xf32>
    %cst_147 = arith.constant 0.000000e+00 : f32
    %344 = vector.broadcast %cst_147 : f32 to vector<8x2xf32>
    %345 = vector.extract_strided_slice %325 {offsets = [0, 0], sizes = [8, 254], strides = [1, 1]} : vector<8x256xf32> to vector<8x254xf32>
    %346 = tpu.concatenate %344, %345 in 1 : vector<8x2xf32>, vector<8x254xf32> -> vector<8x256xf32>
    %c-2_i32_148 = arith.constant -2 : i32
    %347 = vector.broadcast %c-2_i32_148 : i32 to vector<1x256xi32>
    %348 = arith.addi %16, %347 : vector<1x256xi32>
    %c0_i32_149 = arith.constant 0 : i32
    %349 = vector.broadcast %c0_i32_149 : i32 to vector<1x256xi32>
    %350 = arith.cmpi sge, %348, %349 : vector<1x256xi32>
    %c-2_i32_150 = arith.constant -2 : i32
    %351 = vector.broadcast %c-2_i32_150 : i32 to vector<1x256xi32>
    %352 = arith.addi %16, %351 : vector<1x256xi32>
    %c16_i32_151 = arith.constant 16 : i32
    %353 = vector.broadcast %c16_i32_151 : i32 to vector<1x256xi32>
    %354 = arith.cmpi slt, %352, %353 : vector<1x256xi32>
    %355 = arith.andi %350, %354 : vector<1x256xi1>
    %cst_152 = arith.constant 0.000000e+00 : f32
    %356 = vector.shape_cast %355 : vector<1x256xi1> to vector<1x256xi1>
    %357 = vector.broadcast %356 : vector<1x256xi1> to vector<8x256xi1>
    %358 = vector.broadcast %cst_152 : f32 to vector<8x256xf32>
    %359 = arith.select %357, %346, %358 : vector<8x256xi1>, vector<8x256xf32>
    %cst_153 = arith.constant 0.000000e+00 : f32
    %360 = vector.broadcast %cst_153 : f32 to vector<8x1xf32>
    %361 = vector.extract_strided_slice %325 {offsets = [0, 0], sizes = [8, 255], strides = [1, 1]} : vector<8x256xf32> to vector<8x255xf32>
    %362 = tpu.concatenate %360, %361 in 1 : vector<8x1xf32>, vector<8x255xf32> -> vector<8x256xf32>
    %c-1_i32_154 = arith.constant -1 : i32
    %363 = vector.broadcast %c-1_i32_154 : i32 to vector<1x256xi32>
    %364 = arith.addi %16, %363 : vector<1x256xi32>
    %c0_i32_155 = arith.constant 0 : i32
    %365 = vector.broadcast %c0_i32_155 : i32 to vector<1x256xi32>
    %366 = arith.cmpi sge, %364, %365 : vector<1x256xi32>
    %c-1_i32_156 = arith.constant -1 : i32
    %367 = vector.broadcast %c-1_i32_156 : i32 to vector<1x256xi32>
    %368 = arith.addi %16, %367 : vector<1x256xi32>
    %c16_i32_157 = arith.constant 16 : i32
    %369 = vector.broadcast %c16_i32_157 : i32 to vector<1x256xi32>
    %370 = arith.cmpi slt, %368, %369 : vector<1x256xi32>
    %371 = arith.andi %366, %370 : vector<1x256xi1>
    %cst_158 = arith.constant 0.000000e+00 : f32
    %372 = vector.shape_cast %371 : vector<1x256xi1> to vector<1x256xi1>
    %373 = vector.broadcast %372 : vector<1x256xi1> to vector<8x256xi1>
    %374 = vector.broadcast %cst_158 : f32 to vector<8x256xf32>
    %375 = arith.select %373, %362, %374 : vector<8x256xi1>, vector<8x256xf32>
    %cst_159 = arith.constant 0.000000e+00 : f32
    %376 = vector.broadcast %cst_159 : f32 to vector<8x1xf32>
    %377 = vector.extract_strided_slice %325 {offsets = [0, 1], sizes = [8, 255], strides = [1, 1]} : vector<8x256xf32> to vector<8x255xf32>
    %378 = tpu.concatenate %377, %376 in 1 : vector<8x255xf32>, vector<8x1xf32> -> vector<8x256xf32>
    %c1_i32_160 = arith.constant 1 : i32
    %379 = vector.broadcast %c1_i32_160 : i32 to vector<1x256xi32>
    %380 = arith.addi %16, %379 : vector<1x256xi32>
    %c0_i32_161 = arith.constant 0 : i32
    %381 = vector.broadcast %c0_i32_161 : i32 to vector<1x256xi32>
    %382 = arith.cmpi sge, %380, %381 : vector<1x256xi32>
    %c1_i32_162 = arith.constant 1 : i32
    %383 = vector.broadcast %c1_i32_162 : i32 to vector<1x256xi32>
    %384 = arith.addi %16, %383 : vector<1x256xi32>
    %c16_i32_163 = arith.constant 16 : i32
    %385 = vector.broadcast %c16_i32_163 : i32 to vector<1x256xi32>
    %386 = arith.cmpi slt, %384, %385 : vector<1x256xi32>
    %387 = arith.andi %382, %386 : vector<1x256xi1>
    %cst_164 = arith.constant 0.000000e+00 : f32
    %388 = vector.shape_cast %387 : vector<1x256xi1> to vector<1x256xi1>
    %389 = vector.broadcast %388 : vector<1x256xi1> to vector<8x256xi1>
    %390 = vector.broadcast %cst_164 : f32 to vector<8x256xf32>
    %391 = arith.select %389, %378, %390 : vector<8x256xi1>, vector<8x256xf32>
    %cst_165 = arith.constant 0.000000e+00 : f32
    %392 = vector.broadcast %cst_165 : f32 to vector<8x2xf32>
    %393 = vector.extract_strided_slice %325 {offsets = [0, 2], sizes = [8, 254], strides = [1, 1]} : vector<8x256xf32> to vector<8x254xf32>
    %394 = tpu.concatenate %393, %392 in 1 : vector<8x254xf32>, vector<8x2xf32> -> vector<8x256xf32>
    %c2_i32_166 = arith.constant 2 : i32
    %395 = vector.broadcast %c2_i32_166 : i32 to vector<1x256xi32>
    %396 = arith.addi %16, %395 : vector<1x256xi32>
    %c0_i32_167 = arith.constant 0 : i32
    %397 = vector.broadcast %c0_i32_167 : i32 to vector<1x256xi32>
    %398 = arith.cmpi sge, %396, %397 : vector<1x256xi32>
    %c2_i32_168 = arith.constant 2 : i32
    %399 = vector.broadcast %c2_i32_168 : i32 to vector<1x256xi32>
    %400 = arith.addi %16, %399 : vector<1x256xi32>
    %c16_i32_169 = arith.constant 16 : i32
    %401 = vector.broadcast %c16_i32_169 : i32 to vector<1x256xi32>
    %402 = arith.cmpi slt, %400, %401 : vector<1x256xi32>
    %403 = arith.andi %398, %402 : vector<1x256xi1>
    %cst_170 = arith.constant 0.000000e+00 : f32
    %404 = vector.shape_cast %403 : vector<1x256xi1> to vector<1x256xi1>
    %405 = vector.broadcast %404 : vector<1x256xi1> to vector<8x256xi1>
    %406 = vector.broadcast %cst_170 : f32 to vector<8x256xf32>
    %407 = arith.select %405, %394, %406 : vector<8x256xi1>, vector<8x256xf32>
    %cst_171 = arith.constant 0.000000e+00 : f32
    %408 = vector.broadcast %cst_171 : f32 to vector<8x3xf32>
    %409 = vector.extract_strided_slice %325 {offsets = [0, 3], sizes = [8, 253], strides = [1, 1]} : vector<8x256xf32> to vector<8x253xf32>
    %410 = tpu.concatenate %409, %408 in 1 : vector<8x253xf32>, vector<8x3xf32> -> vector<8x256xf32>
    %c3_i32_172 = arith.constant 3 : i32
    %411 = vector.broadcast %c3_i32_172 : i32 to vector<1x256xi32>
    %412 = arith.addi %16, %411 : vector<1x256xi32>
    %c0_i32_173 = arith.constant 0 : i32
    %413 = vector.broadcast %c0_i32_173 : i32 to vector<1x256xi32>
    %414 = arith.cmpi sge, %412, %413 : vector<1x256xi32>
    %c3_i32_174 = arith.constant 3 : i32
    %415 = vector.broadcast %c3_i32_174 : i32 to vector<1x256xi32>
    %416 = arith.addi %16, %415 : vector<1x256xi32>
    %c16_i32_175 = arith.constant 16 : i32
    %417 = vector.broadcast %c16_i32_175 : i32 to vector<1x256xi32>
    %418 = arith.cmpi slt, %416, %417 : vector<1x256xi32>
    %419 = arith.andi %414, %418 : vector<1x256xi1>
    %cst_176 = arith.constant 0.000000e+00 : f32
    %420 = vector.shape_cast %419 : vector<1x256xi1> to vector<1x256xi1>
    %421 = vector.broadcast %420 : vector<1x256xi1> to vector<8x256xi1>
    %422 = vector.broadcast %cst_176 : f32 to vector<8x256xf32>
    %423 = arith.select %421, %410, %422 : vector<8x256xi1>, vector<8x256xf32>
    %424 = tpu.concatenate %343, %359, %375, %325, %391, %407, %423 in 0 : vector<8x256xf32>, vector<8x256xf32>, vector<8x256xf32>, vector<8x256xf32>, vector<8x256xf32>, vector<8x256xf32>, vector<8x256xf32> -> vector<56x256xf32>
    %cst_177 = arith.constant dense<0.000000e+00> : vector<8x256xf32>
    %425 = tpu.matmul %326, %424, %cst_177 {dimension_numbers = #tpu.dot_dimension_numbers<[1], [0], [0], [1], [0, 0, 1, 1], [], []>} : vector<8x56xf32>, vector<56x256xf32>, vector<8x256xf32> -> vector<8x256xf32>
    %426 = vector.broadcast %327 : vector<8x1xf32> to vector<8x256xf32>
    %427 = arith.addf %425, %426 : vector<8x256xf32>
    %cst_178 = arith.constant 0.000000e+00 : f32
    %428 = vector.broadcast %cst_178 : f32 to vector<8x256xf32>
    %429 = arith.maximumf %427, %428 : vector<8x256xf32>
    %cst_179 = arith.constant 0.000000e+00 : f32
    %430 = vector.broadcast %cst_179 : f32 to vector<16x256xf32>
    %cst_180 = arith.constant 0.000000e+00 : f32
    %431 = vector.broadcast %cst_180 : f32 to vector<16x17xf32>
    %432 = vector.extract_strided_slice %18 {offsets = [0, 0], sizes = [16, 239], strides = [1, 1]} : vector<16x256xf32> to vector<16x239xf32>
    %433 = tpu.concatenate %431, %432 in 1 : vector<16x17xf32>, vector<16x239xf32> -> vector<16x256xf32>
    %c-1_i32_181 = arith.constant -1 : i32
    %434 = vector.broadcast %c-1_i32_181 : i32 to vector<1x256xi32>
    %435 = arith.addi %16, %434 : vector<1x256xi32>
    %c0_i32_182 = arith.constant 0 : i32
    %436 = vector.broadcast %c0_i32_182 : i32 to vector<1x256xi32>
    %437 = arith.cmpi sge, %435, %436 : vector<1x256xi32>
    %c-1_i32_183 = arith.constant -1 : i32
    %438 = vector.broadcast %c-1_i32_183 : i32 to vector<1x256xi32>
    %439 = arith.addi %16, %438 : vector<1x256xi32>
    %c16_i32_184 = arith.constant 16 : i32
    %440 = vector.broadcast %c16_i32_184 : i32 to vector<1x256xi32>
    %441 = arith.cmpi slt, %439, %440 : vector<1x256xi32>
    %442 = arith.andi %437, %441 : vector<1x256xi1>
    %cst_185 = arith.constant 0.000000e+00 : f32
    %443 = vector.shape_cast %442 : vector<1x256xi1> to vector<1x256xi1>
    %444 = vector.broadcast %443 : vector<1x256xi1> to vector<16x256xi1>
    %445 = vector.broadcast %cst_185 : f32 to vector<16x256xf32>
    %446 = arith.select %444, %433, %445 : vector<16x256xi1>, vector<16x256xf32>
    %447 = arith.addf %430, %446 : vector<16x256xf32>
    %cst_186 = arith.constant 0.000000e+00 : f32
    %448 = vector.broadcast %cst_186 : f32 to vector<16x16xf32>
    %449 = vector.extract_strided_slice %18 {offsets = [0, 0], sizes = [16, 240], strides = [1, 1]} : vector<16x256xf32> to vector<16x240xf32>
    %450 = tpu.concatenate %448, %449 in 1 : vector<16x16xf32>, vector<16x240xf32> -> vector<16x256xf32>
    %451 = arith.addf %447, %450 : vector<16x256xf32>
    %cst_187 = arith.constant 0.000000e+00 : f32
    %452 = vector.broadcast %cst_187 : f32 to vector<16x15xf32>
    %453 = vector.extract_strided_slice %18 {offsets = [0, 0], sizes = [16, 241], strides = [1, 1]} : vector<16x256xf32> to vector<16x241xf32>
    %454 = tpu.concatenate %452, %453 in 1 : vector<16x15xf32>, vector<16x241xf32> -> vector<16x256xf32>
    %c1_i32_188 = arith.constant 1 : i32
    %455 = vector.broadcast %c1_i32_188 : i32 to vector<1x256xi32>
    %456 = arith.addi %16, %455 : vector<1x256xi32>
    %c0_i32_189 = arith.constant 0 : i32
    %457 = vector.broadcast %c0_i32_189 : i32 to vector<1x256xi32>
    %458 = arith.cmpi sge, %456, %457 : vector<1x256xi32>
    %c1_i32_190 = arith.constant 1 : i32
    %459 = vector.broadcast %c1_i32_190 : i32 to vector<1x256xi32>
    %460 = arith.addi %16, %459 : vector<1x256xi32>
    %c16_i32_191 = arith.constant 16 : i32
    %461 = vector.broadcast %c16_i32_191 : i32 to vector<1x256xi32>
    %462 = arith.cmpi slt, %460, %461 : vector<1x256xi32>
    %463 = arith.andi %458, %462 : vector<1x256xi1>
    %cst_192 = arith.constant 0.000000e+00 : f32
    %464 = vector.shape_cast %463 : vector<1x256xi1> to vector<1x256xi1>
    %465 = vector.broadcast %464 : vector<1x256xi1> to vector<16x256xi1>
    %466 = vector.broadcast %cst_192 : f32 to vector<16x256xf32>
    %467 = arith.select %465, %454, %466 : vector<16x256xi1>, vector<16x256xf32>
    %468 = arith.addf %451, %467 : vector<16x256xf32>
    %cst_193 = arith.constant 0.000000e+00 : f32
    %469 = vector.broadcast %cst_193 : f32 to vector<16x1xf32>
    %470 = vector.extract_strided_slice %18 {offsets = [0, 0], sizes = [16, 255], strides = [1, 1]} : vector<16x256xf32> to vector<16x255xf32>
    %471 = tpu.concatenate %469, %470 in 1 : vector<16x1xf32>, vector<16x255xf32> -> vector<16x256xf32>
    %c-1_i32_194 = arith.constant -1 : i32
    %472 = vector.broadcast %c-1_i32_194 : i32 to vector<1x256xi32>
    %473 = arith.addi %16, %472 : vector<1x256xi32>
    %c0_i32_195 = arith.constant 0 : i32
    %474 = vector.broadcast %c0_i32_195 : i32 to vector<1x256xi32>
    %475 = arith.cmpi sge, %473, %474 : vector<1x256xi32>
    %c-1_i32_196 = arith.constant -1 : i32
    %476 = vector.broadcast %c-1_i32_196 : i32 to vector<1x256xi32>
    %477 = arith.addi %16, %476 : vector<1x256xi32>
    %c16_i32_197 = arith.constant 16 : i32
    %478 = vector.broadcast %c16_i32_197 : i32 to vector<1x256xi32>
    %479 = arith.cmpi slt, %477, %478 : vector<1x256xi32>
    %480 = arith.andi %475, %479 : vector<1x256xi1>
    %cst_198 = arith.constant 0.000000e+00 : f32
    %481 = vector.shape_cast %480 : vector<1x256xi1> to vector<1x256xi1>
    %482 = vector.broadcast %481 : vector<1x256xi1> to vector<16x256xi1>
    %483 = vector.broadcast %cst_198 : f32 to vector<16x256xf32>
    %484 = arith.select %482, %471, %483 : vector<16x256xi1>, vector<16x256xf32>
    %485 = arith.addf %468, %484 : vector<16x256xf32>
    %486 = arith.addf %485, %18 : vector<16x256xf32>
    %cst_199 = arith.constant 0.000000e+00 : f32
    %487 = vector.broadcast %cst_199 : f32 to vector<16x1xf32>
    %488 = vector.extract_strided_slice %18 {offsets = [0, 1], sizes = [16, 255], strides = [1, 1]} : vector<16x256xf32> to vector<16x255xf32>
    %489 = tpu.concatenate %488, %487 in 1 : vector<16x255xf32>, vector<16x1xf32> -> vector<16x256xf32>
    %c1_i32_200 = arith.constant 1 : i32
    %490 = vector.broadcast %c1_i32_200 : i32 to vector<1x256xi32>
    %491 = arith.addi %16, %490 : vector<1x256xi32>
    %c0_i32_201 = arith.constant 0 : i32
    %492 = vector.broadcast %c0_i32_201 : i32 to vector<1x256xi32>
    %493 = arith.cmpi sge, %491, %492 : vector<1x256xi32>
    %c1_i32_202 = arith.constant 1 : i32
    %494 = vector.broadcast %c1_i32_202 : i32 to vector<1x256xi32>
    %495 = arith.addi %16, %494 : vector<1x256xi32>
    %c16_i32_203 = arith.constant 16 : i32
    %496 = vector.broadcast %c16_i32_203 : i32 to vector<1x256xi32>
    %497 = arith.cmpi slt, %495, %496 : vector<1x256xi32>
    %498 = arith.andi %493, %497 : vector<1x256xi1>
    %cst_204 = arith.constant 0.000000e+00 : f32
    %499 = vector.shape_cast %498 : vector<1x256xi1> to vector<1x256xi1>
    %500 = vector.broadcast %499 : vector<1x256xi1> to vector<16x256xi1>
    %501 = vector.broadcast %cst_204 : f32 to vector<16x256xf32>
    %502 = arith.select %500, %489, %501 : vector<16x256xi1>, vector<16x256xf32>
    %503 = arith.addf %486, %502 : vector<16x256xf32>
    %cst_205 = arith.constant 0.000000e+00 : f32
    %504 = vector.broadcast %cst_205 : f32 to vector<16x15xf32>
    %505 = vector.extract_strided_slice %18 {offsets = [0, 15], sizes = [16, 241], strides = [1, 1]} : vector<16x256xf32> to vector<16x241xf32>
    %506 = tpu.concatenate %505, %504 in 1 : vector<16x241xf32>, vector<16x15xf32> -> vector<16x256xf32>
    %c-1_i32_206 = arith.constant -1 : i32
    %507 = vector.broadcast %c-1_i32_206 : i32 to vector<1x256xi32>
    %508 = arith.addi %16, %507 : vector<1x256xi32>
    %c0_i32_207 = arith.constant 0 : i32
    %509 = vector.broadcast %c0_i32_207 : i32 to vector<1x256xi32>
    %510 = arith.cmpi sge, %508, %509 : vector<1x256xi32>
    %c-1_i32_208 = arith.constant -1 : i32
    %511 = vector.broadcast %c-1_i32_208 : i32 to vector<1x256xi32>
    %512 = arith.addi %16, %511 : vector<1x256xi32>
    %c16_i32_209 = arith.constant 16 : i32
    %513 = vector.broadcast %c16_i32_209 : i32 to vector<1x256xi32>
    %514 = arith.cmpi slt, %512, %513 : vector<1x256xi32>
    %515 = arith.andi %510, %514 : vector<1x256xi1>
    %cst_210 = arith.constant 0.000000e+00 : f32
    %516 = vector.shape_cast %515 : vector<1x256xi1> to vector<1x256xi1>
    %517 = vector.broadcast %516 : vector<1x256xi1> to vector<16x256xi1>
    %518 = vector.broadcast %cst_210 : f32 to vector<16x256xf32>
    %519 = arith.select %517, %506, %518 : vector<16x256xi1>, vector<16x256xf32>
    %520 = arith.addf %503, %519 : vector<16x256xf32>
    %cst_211 = arith.constant 0.000000e+00 : f32
    %521 = vector.broadcast %cst_211 : f32 to vector<16x16xf32>
    %522 = vector.extract_strided_slice %18 {offsets = [0, 16], sizes = [16, 240], strides = [1, 1]} : vector<16x256xf32> to vector<16x240xf32>
    %523 = tpu.concatenate %522, %521 in 1 : vector<16x240xf32>, vector<16x16xf32> -> vector<16x256xf32>
    %524 = arith.addf %520, %523 : vector<16x256xf32>
    %cst_212 = arith.constant 0.000000e+00 : f32
    %525 = vector.broadcast %cst_212 : f32 to vector<16x17xf32>
    %526 = vector.extract_strided_slice %18 {offsets = [0, 17], sizes = [16, 239], strides = [1, 1]} : vector<16x256xf32> to vector<16x239xf32>
    %527 = tpu.concatenate %526, %525 in 1 : vector<16x239xf32>, vector<16x17xf32> -> vector<16x256xf32>
    %c1_i32_213 = arith.constant 1 : i32
    %528 = vector.broadcast %c1_i32_213 : i32 to vector<1x256xi32>
    %529 = arith.addi %16, %528 : vector<1x256xi32>
    %c0_i32_214 = arith.constant 0 : i32
    %530 = vector.broadcast %c0_i32_214 : i32 to vector<1x256xi32>
    %531 = arith.cmpi sge, %529, %530 : vector<1x256xi32>
    %c1_i32_215 = arith.constant 1 : i32
    %532 = vector.broadcast %c1_i32_215 : i32 to vector<1x256xi32>
    %533 = arith.addi %16, %532 : vector<1x256xi32>
    %c16_i32_216 = arith.constant 16 : i32
    %534 = vector.broadcast %c16_i32_216 : i32 to vector<1x256xi32>
    %535 = arith.cmpi slt, %533, %534 : vector<1x256xi32>
    %536 = arith.andi %531, %535 : vector<1x256xi1>
    %cst_217 = arith.constant 0.000000e+00 : f32
    %537 = vector.shape_cast %536 : vector<1x256xi1> to vector<1x256xi1>
    %538 = vector.broadcast %537 : vector<1x256xi1> to vector<16x256xi1>
    %539 = vector.broadcast %cst_217 : f32 to vector<16x256xf32>
    %540 = arith.select %538, %527, %539 : vector<16x256xi1>, vector<16x256xf32>
    %541 = arith.addf %524, %540 : vector<16x256xf32>
    %c0_218 = arith.constant 0 : index
    %c0_219 = arith.constant 0 : index
    %542 = vector.load %arg20[%c0_218, %c0_219] : memref<8x16xf32, #tpu.memory_space<vmem>>, vector<8x16xf32>
    %c0_220 = arith.constant 0 : index
    %c0_221 = arith.constant 0 : index
    %543 = vector.load %arg21[%c0_220, %c0_221] : memref<8x1xf32, #tpu.memory_space<vmem>>, vector<8x1xf32>
    %cst_222 = arith.constant dense<0.000000e+00> : vector<8x256xf32>
    %544 = tpu.matmul %542, %541, %cst_222 {dimension_numbers = #tpu.dot_dimension_numbers<[1], [0], [0], [1], [0, 0, 1, 1], [], []>} : vector<8x16xf32>, vector<16x256xf32>, vector<8x256xf32> -> vector<8x256xf32>
    %545 = vector.broadcast %543 : vector<8x1xf32> to vector<8x256xf32>
    %546 = arith.addf %544, %545 : vector<8x256xf32>
    %cst_223 = arith.constant 0.000000e+00 : f32
    %547 = vector.broadcast %cst_223 : f32 to vector<8x256xf32>
    %548 = arith.maximumf %546, %547 : vector<8x256xf32>
    %549 = tpu.concatenate %25, %162, %429, %548 in 0 : vector<8x256xf32>, vector<8x256xf32>, vector<8x256xf32>, vector<8x256xf32> -> vector<32x256xf32>
    %c0_224 = arith.constant 0 : index
    %c0_225 = arith.constant 0 : index
    %c0_226 = arith.constant 0 : index
    %550 = vector.load %arg22[%c0_224, %c0_225, %c0_226] : memref<1x32x256xf32, #tpu.memory_space<vmem>>, vector<1x32x256xf32>
    %551 = vector.shape_cast %550 : vector<1x32x256xf32> to vector<32x256xf32>
    %552 = vector.shape_cast %549 : vector<32x256xf32> to vector<1x32x256xf32>
    tpu.vector_store %arg22[%c0_224, %c0_225, %c0_226], %552 {strides = array<i32>} : memref<1x32x256xf32, #tpu.memory_space<vmem>>, vector<1x32x256xf32>,
    return
  }
  func.func @transform_0(%arg0: i32) -> (i32, i32, i32) {
    %c0_i32 = arith.constant 0 : i32
    %c0_i32_0 = arith.constant 0 : i32
    %c0_i32_1 = arith.constant 0 : i32
    return %arg0, %c0_i32, %c0_i32_0 : i32, i32, i32
  }
  func.func @transform_1(%arg0: i32) -> (i32, i32) {
    %c0_i32 = arith.constant 0 : i32
    %c0_i32_0 = arith.constant 0 : i32
    %c0_i32_1 = arith.constant 0 : i32
    return %c0_i32, %c0_i32_0 : i32, i32
  }
  func.func @transform_2(%arg0: i32) -> (i32, i32) {
    %c0_i32 = arith.constant 0 : i32
    %c0_i32_0 = arith.constant 0 : i32
    %c0_i32_1 = arith.constant 0 : i32
    return %c0_i32, %c0_i32_0 : i32, i32
  }
  func.func @transform_3(%arg0: i32) -> (i32, i32) {
    %c0_i32 = arith.constant 0 : i32
    %c0_i32_0 = arith.constant 0 : i32
    %c0_i32_1 = arith.constant 0 : i32
    return %c0_i32, %c0_i32_0 : i32, i32
  }
  func.func @transform_4(%arg0: i32) -> (i32, i32) {
    %c0_i32 = arith.constant 0 : i32
    %c0_i32_0 = arith.constant 0 : i32
    %c0_i32_1 = arith.constant 0 : i32
    return %c0_i32, %c0_i32_0 : i32, i32
  }
  func.func @transform_5(%arg0: i32) -> (i32, i32) {
    %c0_i32 = arith.constant 0 : i32
    %c0_i32_0 = arith.constant 0 : i32
    %c0_i32_1 = arith.constant 0 : i32
    return %c0_i32, %c0_i32_0 : i32, i32
  }
  func.func @transform_6(%arg0: i32) -> (i32, i32) {
    %c0_i32 = arith.constant 0 : i32
    %c0_i32_0 = arith.constant 0 : i32
    %c0_i32_1 = arith.constant 0 : i32
    return %c0_i32, %c0_i32_0 : i32, i32
  }
  func.func @transform_7(%arg0: i32) -> (i32, i32) {
    %c0_i32 = arith.constant 0 : i32
    %c0_i32_0 = arith.constant 0 : i32
    %c0_i32_1 = arith.constant 0 : i32
    return %c0_i32, %c0_i32_0 : i32, i32
  }
  func.func @transform_8(%arg0: i32) -> (i32, i32) {
    %c0_i32 = arith.constant 0 : i32
    %c0_i32_0 = arith.constant 0 : i32
    %c0_i32_1 = arith.constant 0 : i32
    return %c0_i32, %c0_i32_0 : i32, i32
  }
  func.func @transform_9(%arg0: i32) -> (i32, i32) {
    %c0_i32 = arith.constant 0 : i32
    %c0_i32_0 = arith.constant 0 : i32
    %c0_i32_1 = arith.constant 0 : i32
    return %c0_i32, %c0_i32_0 : i32, i32
  }
  func.func @transform_10(%arg0: i32) -> (i32, i32) {
    %c0_i32 = arith.constant 0 : i32
    %c0_i32_0 = arith.constant 0 : i32
    %c0_i32_1 = arith.constant 0 : i32
    return %c0_i32, %c0_i32_0 : i32, i32
  }
  func.func @transform_11(%arg0: i32) -> (i32, i32) {
    %c0_i32 = arith.constant 0 : i32
    %c0_i32_0 = arith.constant 0 : i32
    %c0_i32_1 = arith.constant 0 : i32
    return %c0_i32, %c0_i32_0 : i32, i32
  }
  func.func @transform_12(%arg0: i32) -> (i32, i32) {
    %c0_i32 = arith.constant 0 : i32
    %c0_i32_0 = arith.constant 0 : i32
    %c0_i32_1 = arith.constant 0 : i32
    return %c0_i32, %c0_i32_0 : i32, i32
  }
  func.func @transform_13(%arg0: i32) -> (i32, i32) {
    %c0_i32 = arith.constant 0 : i32
    %c0_i32_0 = arith.constant 0 : i32
    %c0_i32_1 = arith.constant 0 : i32
    return %c0_i32, %c0_i32_0 : i32, i32
  }
  func.func @transform_14(%arg0: i32) -> (i32, i32) {
    %c0_i32 = arith.constant 0 : i32
    %c0_i32_0 = arith.constant 0 : i32
    %c0_i32_1 = arith.constant 0 : i32
    return %c0_i32, %c0_i32_0 : i32, i32
  }
  func.func @transform_15(%arg0: i32) -> (i32, i32) {
    %c0_i32 = arith.constant 0 : i32
    %c0_i32_0 = arith.constant 0 : i32
    %c0_i32_1 = arith.constant 0 : i32
    return %c0_i32, %c0_i32_0 : i32, i32
  }
  func.func @transform_16(%arg0: i32) -> (i32, i32) {
    %c0_i32 = arith.constant 0 : i32
    %c0_i32_0 = arith.constant 0 : i32
    %c0_i32_1 = arith.constant 0 : i32
    return %c0_i32, %c0_i32_0 : i32, i32
  }
  func.func @transform_17(%arg0: i32) -> (i32, i32) {
    %c0_i32 = arith.constant 0 : i32
    %c0_i32_0 = arith.constant 0 : i32
    %c0_i32_1 = arith.constant 0 : i32
    return %c0_i32, %c0_i32_0 : i32, i32
  }
  func.func @transform_18(%arg0: i32) -> (i32, i32) {
    %c0_i32 = arith.constant 0 : i32
    %c0_i32_0 = arith.constant 0 : i32
    %c0_i32_1 = arith.constant 0 : i32
    return %c0_i32, %c0_i32_0 : i32, i32
  }
  func.func @transform_19(%arg0: i32) -> (i32, i32) {
    %c0_i32 = arith.constant 0 : i32
    %c0_i32_0 = arith.constant 0 : i32
    %c0_i32_1 = arith.constant 0 : i32
    return %c0_i32, %c0_i32_0 : i32, i32
  }
  func.func @transform_20(%arg0: i32) -> (i32, i32) {
    %c0_i32 = arith.constant 0 : i32
    %c0_i32_0 = arith.constant 0 : i32
    %c0_i32_1 = arith.constant 0 : i32
    return %c0_i32, %c0_i32_0 : i32, i32
  }
  func.func @transform_21(%arg0: i32) -> (i32, i32, i32) {
    %c0_i32 = arith.constant 0 : i32
    %c0_i32_0 = arith.constant 0 : i32
    %c0_i32_1 = arith.constant 0 : i32
    return %arg0, %c0_i32, %c0_i32_0 : i32, i32, i32
  }
}

</mosaic_0001>

<bundles_post_ra>
// kernel: tpu_custom_call.1
= control target key start
LH: loop header
LB: loop body
LE: loop exit
PB: predicated region body
PF: predicated region fallthrough
CT: control target
= control target key end

     0   :  { %s3512_s0 = inlined_call_operand.vmem [shape: f32[2,16,256], index: 0, kind: input, shape index: {}]   ;;  %s3513_s1 = inlined_call_operand.vmem [shape: f32[8,16], index: 1, kind: input, shape index: {}]   ;;  %s3514_s2 = inlined_call_operand.vmem [shape: f32[8,1], index: 2, kind: input, shape index: {}]   ;;  %s3515_s3 = inlined_call_operand.vmem [shape: f32[8,16], index: 3, kind: input, shape index: {}]   ;;  %s3516_s4 = inlined_call_operand.vmem [shape: f32[8,1], index: 4, kind: input, shape index: {}]   ;;  %s3517_s5 = inlined_call_operand.vmem [shape: f32[8,56], index: 5, kind: input, shape index: {}]   ;;  %s3518_s6 = inlined_call_operand.vmem [shape: f32[8,1], index: 6, kind: input, shape index: {}]   ;;  %s3519_s7 = inlined_call_operand.vmem [shape: f32[8,56], index: 7, kind: input, shape index: {}]   ;;  %s3520_s8 = inlined_call_operand.vmem [shape: f32[8,1], index: 8, kind: input, shape index: {}]   ;;  %s3521_s9 = inlined_call_operand.vmem [shape: f32[8,16], index: 9, kind: input, shape index: {}]   ;;  %s3522_s10 = inlined_call_operand.vmem [shape: f32[8,1], index: 10, kind: input, shape index: {}]   ;;  %s3523_s11 = inlined_call_operand.hbm [shape: f32[8,56], index: 11, kind: input, shape index: {}]   ;;  %s3524_s12 = inlined_call_operand.vmem [shape: f32[8,1], index: 12, kind: input, shape index: {}]   ;;  %s3525_s13 = inlined_call_operand.vmem [shape: f32[8,56], index: 13, kind: input, shape index: {}]   ;;  %s3526_s14 = inlined_call_operand.vmem [shape: f32[8,1], index: 14, kind: input, shape index: {}]   ;;  %s3527_s15 = inlined_call_operand.hbm [shape: f32[8,56], index: 15, kind: input, shape index: {}]   ;;  %s3528_s16 = inlined_call_operand.vmem [shape: f32[8,1], index: 16, kind: input, shape index: {}]   ;;  %s3529_s17 = inlined_call_operand.vmem [shape: f32[8,56], index: 17, kind: input, shape index: {}]   ;;  %s3530_s18 = inlined_call_operand.vmem [shape: f32[8,1], index: 18, kind: input, shape index: {}]   ;;  %s3531_s19 = inlined_call_operand.hbm [shape: f32[8,16], index: 19, kind: input, shape index: {}]   ;;  %s3532_s20 = inlined_call_operand.vmem [shape: f32[8,1], index: 20, kind: input, shape index: {}]   ;;  %s3533_s21 = inlined_call_operand.hbm [shape: f32[2,32,256], index: 21, kind: output, shape index: {}]  }
   0x1   :  { %3585 = sst [smem:[#allocation16_spill]] %s3512_s0 }
   0x2   :  { %3586 = sst [smem:[#allocation17_spill]] %s3513_s1 }
   0x3   :  { %3587 = sst [smem:[#allocation18_spill]] %s3514_s2 }
   0x4   :  { %3588 = sst [smem:[#allocation19_spill]] %s3515_s3 }
   0x5   :  { %3589 = sst [smem:[#allocation20_spill]] %s3516_s4 }
   0x6   :  { %3590 = sst [smem:[#allocation21_spill]] %s3517_s5 }
   0x7   :  { %3591 = sst [smem:[#allocation22_spill]] %s3518_s6 }
   0x8   :  { %26 = vsyncpa [#allocation3], 0 }
   0x9   :  { %27 = vsyncpa [#allocation6], 0 }
   0xa   :  { %28 = vsyncpa [#allocation4], 0 }
   0xb   :  { %30 = vsyncpa [#allocation4 + $0x1], 0  ;;  %s2752_s2 = smov 0   ;;  %s2754_s25 = smov 0  }
   0xc   :  { %s2756_s26 = smov 0   ;;  %s2758_s27 = smov 0  }
   0xd LB: > { %3592 = sst [smem:[#allocation12_spill]] %s2613_s26  ;;  %s2773_s3 = sadd.s32 4294967295, %s2617_s27   ;;  %s2617_s27 = sphi %s2758_s27, %s3706_s27   ;;  %s2613_s26 = sphi %s2756_s26, %s3708_s26   ;;  %s2609_s25 = sphi %s2754_s25, %s3710_s25   ;;  %s2605_s2 = sphi %s2752_s2, %s3709_s2  }
   0xe   : > { %s2286_s28 = sadd.s32 4294967294, %s2617_s27   ;;  %s2777_s29 = sadd.s32 1, %s2617_s27  }
   0xf   : > { %3593 = sst [smem:[#allocation13_spill]] %s2777_s29  ;;  %s489_s0 = sadd.s32 1, %s2613_s26 }
  0x10   : > { %s486_s4 = ssub.s32 %s2617_s27, %s2777_s29  ;;  %p499_p0 = scmp.ne.s32.totalorder %s2613_s26, %s2609_s25 }
  0x11   : > { %p487_p1 = scmp.eq.s32.totalorder %s486_s4, 0  ;;  %p500_p2 = scmp.eq.s32.totalorder %s2773_s3, 1 }
  0x12   : > { %p505_p3 = scmp.ne.s32.totalorder %s2609_s25, %s2605_s2  ;;  %p506_p4 = scmp.eq.s32.totalorder %s2286_s28, 1 }
  0x13   : > { %s2788_s30 = scalar_select %p487_p1, %s2613_s26, %s489_s0  }
  0x14   : > { %p2790_p5 = por %p500_p2, %p499_p0  ;;  %p2794_p6 = por %p506_p4, %p505_p3 }
  0x15   : > { %3594 = sst [smem:[#allocation14_spill]] %s2788_s30  ;;  %p2287_p7 = scmp.ge.s32.totalorder %s2617_s27, 1 }
  0x16   : > { %s3595_s5 = scalar_select %p2790_p5, 1, 0 }
  0x17   : > { %s3596_s22 = scalar_select %p2794_p6, 1, 0 }
  0x18   : > { %p513_p8 = scmp.lt.s32.totalorder %s2617_s27, 3  ;;  %p3537_p9 = scmp.eq.s32.totalorder %s2773_s3, 0 }
  0x19   : > { %3597 = sst [smem:[#allocation15_spill]] %s3596_s22  ;;  %s2619_s1 = smov [#allocation5]  }
  0x1a   : > { %p2801_p10 = pnand %p2287_p7, %p513_p8  ;;  %s576_s24 = sshll.u32 %s2619_s1, 4  ;;  %s577_s24 = int_to_ptr.vmem [resolvable:$true] %s576_s24 }
  0x1b   : > { %s2620_s28 = smov [#allocation2]   ;;  %s2621_s30 = smov [#allocation7]  }
  0x1c   : > { %s3598_s23 = scalar_select %p2801_p10, 1, 0 }
  0x1d   : > { %p2393_p11 = pneg %p2801_p10  ;;  %s556_s0 = sshll.u32 %s2620_s28, 4  ;;  %s557_s0 = int_to_ptr.vmem [resolvable:$true] %s556_s0 }
  0x1e   : > { %s596_s26 = sshll.u32 %s2621_s30, 4  ;;  %s2482_s1 = scalar_lea.vmem %s577_s24, 128  ;;  %s2813_s26 = int_to_ptr.vmem [resolvable:$true] %s596_s26 }
  0x1f   : > { %p2809_p12 = pnand %p3537_p9, %p2393_p11  ;;  %p2483_p0 = scmp.ne.s32.totalorder %s577_s24, %s2482_s1 }
  0x20   : > { %p2490_p3 = scmp.lt.s32.totalorder %s577_s24, %s577_s24  ;;  %p2491_p4 = scmp.lt.s32.totalorder %s2482_s1, %s2482_s1 }
  0x21   : > { %p2473_p13 = pneg %p2809_p12 }
  0x22   : > { %p2492_p7 = por %p2491_p4, %p2490_p3 }
  0x23   : > { %p2485_p1 = pnand %p2483_p0, %p2473_p13 }
  0x25   : > { %p2486_p2 = pneg %p2485_p1 }
  0x27   : > { %p2493_p8 = pnand %p2492_p7, %p2486_p2 }
  0x29   : > { %2496 = shalt.err (!%p2493_p8)
}
  0x2a   : > { %2399 = dma.hbm_to_vmem [thread:$0]  (!%p2809_p12), %s3527_s15, 128, %s577_s24, [#allocation6]  }
  0x2b   : > { %s2508_s30 = scalar_lea.vmem %s557_s0, 128  ;;  %p2516_p0 = scmp.lt.s32.totalorder %s557_s0, %s557_s0 }
  0x2c   : > { %p2509_p11 = scmp.ne.s32.totalorder %s557_s0, %s2508_s30  ;;  %p2517_p1 = scmp.lt.s32.totalorder %s2508_s30, %s2508_s30 }
  0x2e   : > { %p2511_p9 = pnand %p2509_p11, %p2473_p13  ;;  %p2518_p5 = por %p2517_p1, %p2516_p0 }
  0x30   : > { %p2512_p6 = pneg %p2511_p9 }
  0x32   : > { %p2519_p10 = pnand %p2518_p5, %p2512_p6 }
  0x34   : > { %2522 = shalt.err (!%p2519_p10)
}
  0x35   : > { %2396 = dma.hbm_to_vmem [thread:$0]  (!%p2809_p12), %s3523_s11, 128, %s557_s0, [#allocation3]  }
  0x36   : > { %s2534_s29 = scalar_lea.vmem %s2813_s26, 128  ;;  %p2542_p4 = scmp.lt.s32.totalorder %s2813_s26, %s2813_s26 }
  0x37   : > { %p2535_p2 = scmp.ne.s32.totalorder %s2813_s26, %s2534_s29  ;;  %p2543_p5 = scmp.lt.s32.totalorder %s2534_s29, %s2534_s29 }
  0x39   : > { %p2537_p9 = pnand %p2535_p2, %p2473_p13  ;;  %p2544_p6 = por %p2543_p5, %p2542_p4 }
  0x3b   : > { %p2538_p3 = pneg %p2537_p9 }
  0x3d   : > { %p2545_p10 = pnand %p2544_p6, %p2538_p3 }
  0x3f   : > { %2548 = shalt.err (!%p2545_p10)
}
  0x40   : > { %2402 = dma.hbm_to_vmem [thread:$0]  (!%p2809_p12), %s3531_s19, 128, %s2813_s26, [#allocation6]  }
  0x41   : > { %p3600_p7 = scmp.ne.s32.totalorder %s3598_s23, 0 }
  0x42   : > { %p3601_p8 = scmp.eq.s32.totalorder (!%p3600_p7), %s2773_s3, 0 }
  0x43   : > { %620 = sbr.rel (%p3600_p7) target bundleno = 2013 (0x7dd), region = 104 }
  0x48   : > { %2592 = dma.done.wait (%p3601_p8), [#allocation3], 128   ;;  %p3602_p13 = pmov %p3601_p8 }
  0x49   : > { %p3603_p11 = pmov %p3601_p8 }
  0x4a   : > { %2594 = vsyncadd (%p3602_p13), [#allocation3], 4294967168 }
  0x4b   : > { %2596 = dma.done.wait (%p3603_p11), [#allocation6], 256   ;;  %p3604_p0 = pmov %p3601_p8 }
  0x4c   : > { %p688_p1 = scmp.lt.s32.totalorder %s2773_s3, 1  ;;  %v2622_v0 = vmov 0.0   ;;  %v2623_v1 = vmov 0   ;;  %s3605_s28 = sld [smem:[#allocation16_spill]]  ;;  %vm731_vm0 = vcmask 130048   ;;  %v1254_v16 = vld [vmem:[%s3522_s10] sm:$0xff]  ;;  %v693_v18 = vlaneseq }
  0x4d   : > { %2598 = vsyncadd (%p3604_p0), [#allocation6], 4294967040  ;;  %882 = vmatprep.mubr.f32.mxu1 %v2622_v0  ;;  %2468 = vset.pattern.permute.xlu0 %v2623_v1  ;;  %s3606_s22 = sld [smem:[#allocation20_spill]]  ;;  %s3577_s1 = smov 126   ;;  %vm3569_vm1 = vcmask 1022976   ;;  %vm3573_vm3 = vcmask 1031168  }
  0x4e   : > { %s689_s26 = scalar_select %p688_p1, %s2773_s3, 1  ;;  %799 = vmatprep.mubr.f32.mxu0 %v2622_v0  ;;  %2469 = vset.pattern.permute.xlu1 %v2623_v1  ;;  %v694_v19 = vand.u32 127, %v693_v18  ;;  %vm3562_vm6 = vcmask 1039360   ;;  %vm3545_vm10 = vcmask 7168   ;;  %vm3560_vm12 = vcmask 15360   ;;  %v1253_v60 = vld [vmem:[%s3521_s9] sm:$0xff] }
  0x4f   : > { %s3567_s29 = smov 125   ;;  %s3579_s24 = smov 1   ;;  %vm3558_vm15 = vcmask 23552   ;;  %v1337_v18 = vld [vmem:[%s3524_s12] sm:$0xff] }
  0x50   : > { %s2377_s23 = sshll.u32 %s689_s26, 5  ;;  %s3549_s26 = smov 2   ;;  %v695_v20 = vadd.s32 128, %v694_v19  ;;  %v700_v24 = vand.u32 15, %v694_v19 }
  0x51   : > { %s3609_s6 = sld [smem:[#allocation22_spill]]  ;;  %s3581_s0 = smov 112  }
  0x52   : > { %s2863_s30 = scalar_lea.vmem %s3605_s28, %s2377_s23  ;;  %s3607_s23 = sld [smem:[#allocation19_spill]]  ;;  %v707_v21 = vand.u32 15, %v695_v20  ;;  %v2934_v28 = vadd.s32 3, %v700_v24  ;;  %v2938_v30 = vadd.s32 2, %v700_v24  ;;  %v2944_v34 = vadd.s32 1, %v700_v24 }
  0x53   : > { %v2866_v2 = vld [vmem:[%s2863_s30 + $0x18] sm:$0xff]  ;;  %v2869_v3 = vld [vmem:[%s2863_s30 + $0x10] sm:$0xff]  ;;  %v2872_v4 = vld [vmem:[%s2863_s30 + $0x8] sm:$0xff]  ;;  %s3608_s28 = sld [smem:[#allocation17_spill]]  ;;  %v2962_v42 = vadd.s32 4294967295, %v700_v24  ;;  %v2972_v46 = vadd.s32 4294967294, %v700_v24 }
  0x54   : > { %846 = vmatprep.subr.mxu1 %v2866_v2  ;;  %v2876_v5 = vld [vmem:[%s2863_s30] sm:$0xff]  ;;  %763 = vmatprep.subr.mxu0 %v2866_v2  ;;  %v2932_v25 = vadd.s32 3, %v707_v21  ;;  %v2936_v29 = vadd.s32 2, %v707_v21  ;;  %v2941_v31 = vadd.s32 1, %v707_v21  ;;  %vm3571_vm4 = vcmp.lt.s32.totalorder %v2934_v28, 16  ;;  %s3610_s4 = sld [smem:[#allocation21_spill]] }
  0x55   : > { %v809_v6 = vld [vmem:[%s3606_s22] sm:$0xff]  ;;  %847 = vmatpush1.msra.mxu1 %v2869_v3  ;;  %764 = vmatpush1.msra.mxu0 %v2869_v3  ;;  %s3541_s22 = smov 127   ;;  %vm3575_vm7 = vcmp.lt.s32.totalorder %v2938_v30, 16  ;;  %v2956_v38 = vadd.s32 4294967295, %v707_v21  ;;  %vm3543_vm9 = vcmp.lt.s32.totalorder %v2944_v34, 16  ;;  %v2968_v45 = vadd.s32 4294967294, %v707_v21 }
  0x56   : > { %812 = vperm.xlu0 %2468, %v809_v6   ;;  %848 = vmatprep.subr.mxu1 %v2872_v4  ;;  %vm3570_vm2 = vcmp.lt.s32.totalorder %v2932_v25, 16  ;;  %vm3574_vm5 = vcmp.lt.s32.totalorder %v2936_v29, 16  ;;  %vm3544_vm8 = vcmp.lt.s32.totalorder %v2941_v31, 16  ;;  %v2977_v47 = vadd.s32 4294967293, %v707_v21  ;;  %p3702_p2 = scmp.ne.s32.totalorder %s3595_s5, 0 }
  0x57   : > { %849 = vmatpush1.msra.mxu1 %v2876_v5  ;;  %765 = vmatprep.subr.mxu0 %v2872_v4  ;;  %v892_v17 = vld [vmem:[%s3609_s6] sm:$0xff]  ;;  %vm3561_vm11 = vcmp.ge.s32.totalorder %v2956_v38, 0  ;;  %vm3546_vm13 = vcmp.ge.s32.totalorder %v2962_v42, 0  ;;  %v2981_v50 = vadd.s32 4294967293, %v700_v24  ;;  %vm3559_vm14 = vcmp.ge.s32.totalorder %v2968_v45, 0  ;;  %s685_s6 = sand.u32 1, %s2609_s25  }
  0x58   : > { %v808_v7 = vld [vmem:[%s3607_s23] sm:$0xff]  ;;  %766 = vmatpush1.msra.mxu0 %v2876_v5  ;;  %s3547_s23 = smov 3  }
  0x59   : > { %2300 = vmatmul.mubr.msk.f32.vlgmr.msra.gmra.mxu1 %vm731_vm0, %v808_v7  ;;  %v724_v9 = vld [vmem:[%s3608_s28] sm:$0xff]  ;;  %s3565_s28 = smov 32  }
  0x5a   : > { %1244 = vmatprep.mubr.f32.mxu1 %v2622_v0  ;;  %2299 = vmatmul.mubr.msk.f32.vlgmr.msra.gmra.mxu0 %vm731_vm0, %v724_v9  ;;  %v891_v59 = vld [vmem:[%s3610_s4] sm:$0xff]  ;;  %s3583_s4 = smov 16  }
  0x5b   : > { %1106 = vmatprep.mubr.f32.mxu0 %v2622_v0 }
  0xd1   : > { %v813_v8 = vpop.permute.xlu0 %812 }
 0x119   : > { %v884_v10 = vpop.f32.mrf.mxu1 }
 0x11a   : > { %v885_v11 = vadd.f32 %v884_v10, %v813_v8  ;;  %v3020_v61 = vpop.f32.mrf.mxu0 }
 0x11b   : > { %v886_v13 = vpop.f32.mrf.mxu1 }
 0x11c   : > { %v2898_v12 = vmax.f32 %v885_v11, 0.0  ;;  %v887_v14 = vadd.f32 %v886_v13, %v813_v8  ;;  %v3022_v62 = vpop.f32.mrf.mxu0 }
 0x11e   : > { %987 = vrot.lane.b32.xlu0 %v2898_v12, %s3577_s1  ;;  %1010 = vrot.lane.b32.xlu1 %v2898_v12, %s3567_s29  ;;  %v2908_v15 = vmax.f32 %v887_v14, 0.0 }
 0x122   : > { %964 = vrot.lane.b32.xlu0 %v2898_v12, %s3541_s22  ;;  %941 = vrot.lane.b32.xlu1 %v2898_v12, %s3579_s24 }
 0x126   : > { %1012 = vrot.lane.b32.xlu0 %v2908_v15, %s3567_s29  ;;  %989 = vrot.lane.b32.xlu1 %v2908_v15, %s3577_s1 }
 0x12a   : > { %943 = vrot.lane.b32.xlu0 %v2908_v15, %s3579_s24  ;;  %966 = vrot.lane.b32.xlu1 %v2908_v15, %s3541_s22  ;;  %s3551_s22 = smov 96  }
 0x12e   : > { %920 = vrot.lane.b32.xlu0 %v2908_v15, %s3549_s26  ;;  %918 = vrot.lane.b32.xlu1 %v2898_v12, %s3549_s26  ;;  %s3563_s26 = smov 48  }
 0x132   : > { %897 = vrot.lane.b32.xlu0 %v2908_v15, %s3547_s23  ;;  %895 = vrot.lane.b32.xlu1 %v2898_v12, %s3547_s23  ;;  %s3553_s23 = smov 80  }
 0x136   : > { %1257 = vperm.xlu0 %2468, %v1254_v16   ;;  %1035 = vperm.xlu1 %2469, %v892_v17  }
 0x190   : > { %v988_v22 = vpop.permute.xlu0 %987  ;;  %v1011_v23 = vpop.permute.xlu1 %1010 }
 0x194   : > { %v965_v26 = vpop.permute.xlu0 %964  ;;  %v942_v27 = vpop.permute.xlu1 %941 }
 0x195   : > { %v949_v52 = vsel %vm3545_vm10, 0.0, %v942_v27 }
 0x198   : > { %v1013_v32 = vpop.permute.xlu0 %1012  ;;  %v990_v33 = vpop.permute.xlu1 %989 }
 0x199   : > { %v1015_v35 = vsel %vm3569_vm1, %v1011_v23, %v1013_v32  ;;  %v1018_v36 = vsel %vm3569_vm1, %v1013_v32, 0.0  ;;  %v995_v37 = vsel %vm3573_vm3, %v990_v33, 0.0  ;;  %v992_v39 = vsel %vm3573_vm3, %v988_v22, %v990_v33 }
 0x19a   : > { %2301 = vmatprep.subr.msk.mxu0 %vm3570_vm2, %v1018_v36 }
 0x19b   : > { %2302 = vmatpush1.msk.msra.mxu0 %vm3571_vm4, %v1015_v35 }
 0x19c   : > { %v944_v40 = vpop.permute.xlu0 %943  ;;  %v967_v41 = vpop.permute.xlu1 %966  ;;  %2303 = vmatprep.subr.msk.mxu0 %vm3574_vm5, %v995_v37 }
 0x19d   : > { %v969_v43 = vsel %vm3562_vm6, %v965_v26, %v967_v41  ;;  %2304 = vmatpush1.msk.msra.mxu0 %vm3575_vm7, %v992_v39  ;;  %v972_v44 = vsel %vm3562_vm6, %v967_v41, 0.0  ;;  %v946_v51 = vsel %vm3545_vm10, %v942_v27, %v944_v40  ;;  %vm3555_vm10 = vcmp.ge.s32.totalorder %v2981_v50, 0 }
 0x19e   : > { %2305 = vmatprep.subr.msk.mxu0 %vm3544_vm8, %v972_v44  ;;  %vm3556_vm8 = vcmp.ge.s32.totalorder %v2977_v47, 0 }
 0x19f   : > { %2306 = vmatpush1.msk.msra.mxu0 %vm3543_vm9, %v969_v43  ;;  %vm3557_vm9 = vcmp.ge.s32.totalorder %v2972_v46, 0 }
 0x1a0   : > { %v921_v48 = vpop.permute.xlu0 %920  ;;  %v919_v49 = vpop.permute.xlu1 %918  ;;  %1066 = vmatprep.subr.mxu0 %v2908_v15 }
 0x1a1   : > { %1067 = vmatpush1.msra.mxu0 %v2898_v12  ;;  %v923_v53 = vsel %vm3560_vm12, %v919_v49, %v921_v48  ;;  %v926_v54 = vsel %vm3560_vm12, 0.0, %v919_v49 }
 0x1a2   : > { %2307 = vmatprep.subr.msk.mxu0 %vm3561_vm11, %v946_v51  ;;  %vm3572_vm11 = vcmask 392192  }
 0x1a3   : > { %2308 = vmatpush1.msk.msra.mxu0 %vm3546_vm13, %v949_v52  ;;  %vm1038_vm13 = vcmask 457728   ;;  %vm3090_vm6 = vmneg %vm3572_vm11  ;;  %v1115_v52 = vld [vmem:[%s3519_s7] sm:$0xff] }
 0x1a4   : > { %v898_v55 = vpop.permute.xlu0 %897  ;;  %v896_v56 = vpop.permute.xlu1 %895  ;;  %2309 = vmatprep.subr.msk.mxu0 %vm3559_vm14, %v923_v53  ;;  %vm3576_vm14 = vcmask 261120  }
 0x1a5   : > { %v903_v57 = vsel %vm3558_vm15, 0.0, %v896_v56  ;;  %2310 = vmatpush1.msk.msra.mxu0 %vm3557_vm9, %v926_v54  ;;  %v900_v58 = vsel %vm3558_vm15, %v896_v56, %v898_v55  ;;  %vm1149_vm9 = vcmask 916480   ;;  %vm3074_vm15 = vmneg %vm731_vm0 }
 0x1a6   : > { %2311 = vmatprep.subr.msk.mxu0 %vm3556_vm8, %v900_v58  ;;  %vm1158_vm8 = vcmask 785408   ;;  %vm3082_vm12 = vmneg %vm3576_vm14 }
 0x1a7   : > { %2312 = vmatpush1.msk.msra.mxu0 %vm3555_vm10, %v903_v57  ;;  %vm1167_vm10 = vcmask 654336  }
 0x1a8   : > { %2313 = vmatmul.mubr.msk.f32.vlgmr.msra.gmra.mxu0 %vm1038_vm13, %v891_v59  ;;  %1291 = vmatprep.subr.mxu0 %v2866_v2 }
 0x1a9   : > { %1292 = vmatpush1.msra.mxu0 %v2869_v3  ;;  %1327 = vmatprep.mubr.f32.mxu0 %v2622_v0 }
 0x1aa   : > { %1293 = vmatprep.subr.mxu0 %v2872_v4 }
 0x1ab   : > { %1294 = vmatpush1.msra.mxu0 %v2876_v5 }
 0x1ac   : > { %2324 = vmatmul.mubr.msk.f32.vlgmr.msra.gmra.mxu0 %vm731_vm0, %v1253_v60 }
 0x1ad   : > { %1605 = vmatprep.mubr.f32.mxu0 %v2622_v0 }
 0x1b1   : > { %v1036_v63 = vpop.permute.xlu1 %1035  ;;  %v1258_v12 = vpop.permute.xlu0 %1257 }
 0x268   : > { %v1108_v1 = vpop.f32.mrf.mxu0 }
 0x269   : > { %v1109_v6 = vadd.f32 %v1108_v1, %v1036_v63 }
 0x26a   : > { %v1110_v7 = vpop.f32.mrf.mxu0 }
 0x26b   : > { %v1113_v8 = vmax.f32 %v1109_v6, 0.0  ;;  %v1111_v9 = vadd.f32 %v1110_v7, %v1036_v63 }
 0x26c   : > { %v1329_v11 = vpop.f32.mrf.mxu0 }
 0x26d   : > { %v1114_v10 = vmax.f32 %v1111_v9, 0.0  ;;  %1163 = vrot.lane.b32.xlu1 %v1113_v8, %s3553_s23  ;;  %v1330_v14 = vadd.f32 %v1329_v11, %v1258_v12 }
 0x26e   : > { %v1331_v13 = vpop.f32.mrf.mxu0 }
 0x26f   : > { %1165 = vrot.lane.b32.xlu0 %v1114_v10, %s3553_s23  ;;  %v1332_v15 = vadd.f32 %v1331_v13, %v1258_v12  ;;  %v3035_v16 = vmax.f32 %v1330_v14, 0.0  ;;  %v1336_v14 = vld [vmem:[#allocation2] sm:$0xff] }
 0x271   : > { %1154 = vrot.lane.b32.xlu1 %v1113_v8, %s3551_s22  ;;  %v3038_v17 = vmax.f32 %v1332_v15, 0.0 }
 0x273   : > { %1156 = vrot.lane.b32.xlu0 %v1114_v10, %s3551_s22 }
 0x275   : > { %1145 = vrot.lane.b32.xlu1 %v1113_v8, %s3581_s0 }
 0x277   : > { %1147 = vrot.lane.b32.xlu0 %v1114_v10, %s3581_s0 }
 0x279   : > { %1137 = vrot.lane.b32.xlu1 %v1113_v8, %s3583_s4 }
 0x27b   : > { %1139 = vrot.lane.b32.xlu0 %v1114_v10, %s3583_s4 }
 0x27d   : > { %1128 = vrot.lane.b32.xlu1 %v1113_v8, %s3565_s28 }
 0x27f   : > { %1130 = vrot.lane.b32.xlu0 %v1114_v10, %s3565_s28 }
 0x281   : > { %1119 = vrot.lane.b32.xlu1 %v1113_v8, %s3563_s26 }
 0x283   : > { %1121 = vrot.lane.b32.xlu0 %v1114_v10, %s3563_s26 }
 0x285   : > { %1380 = vrot.lane.b32.xlu1 %v3035_v16, %s3553_s23 }
 0x287   : > { %1382 = vrot.lane.b32.xlu0 %v3038_v17, %s3553_s23  ;;  %s3617_s23 = smov 127  }
 0x289   : > { %1372 = vrot.lane.b32.xlu1 %v3035_v16, %s3551_s22 }
 0x28b   : > { %1374 = vrot.lane.b32.xlu0 %v3038_v17, %s3551_s22  ;;  %s3618_s22 = smov 2  }
 0x28d   : > { %1364 = vrot.lane.b32.xlu1 %v3035_v16, %s3581_s0 }
 0x28f   : > { %1366 = vrot.lane.b32.xlu0 %v3038_v17, %s3581_s0 }
 0x291   : > { %1356 = vrot.lane.b32.xlu1 %v3035_v16, %s3583_s4 }
 0x293   : > { %1358 = vrot.lane.b32.xlu0 %v3038_v17, %s3583_s4 }
 0x295   : > { %1348 = vrot.lane.b32.xlu1 %v3035_v16, %s3565_s28 }
 0x297   : > { %1350 = vrot.lane.b32.xlu0 %v3038_v17, %s3565_s28  ;;  %s3637_s28 = smov 96  }
 0x299   : > { %1340 = vrot.lane.b32.xlu1 %v3035_v16, %s3563_s26 }
 0x29b   : > { %1342 = vrot.lane.b32.xlu0 %v3038_v17, %s3563_s26  ;;  %s3619_s26 = smov 3  }
 0x29d   : > { %1390 = vperm.xlu1 %2469, %v1337_v18  }
 0x2df   : > { %v1164_v19 = vpop.permute.xlu1 %1163 }
 0x2e1   : > { %v1166_v20 = vpop.permute.xlu0 %1165 }
 0x2e2   : > { %v1168_v21 = vsel %vm1167_vm10, %v1164_v19, %v1166_v20  ;;  %2314 = vmatprep.subr.msk.mxu1 %vm1167_vm10, %v1166_v20 }
 0x2e3   : > { %1199 = vmatpush1.msra.mxu1 %v1168_v21  ;;  %v1155_v22 = vpop.permute.xlu1 %1154 }
 0x2e5   : > { %v1157_v23 = vpop.permute.xlu0 %1156 }
 0x2e6   : > { %v1159_v24 = vsel %vm1158_vm8, %v1155_v22, %v1157_v23  ;;  %2315 = vmatprep.subr.msk.mxu1 %vm1158_vm8, %v1157_v23 }
 0x2e7   : > { %1201 = vmatpush1.msra.mxu1 %v1159_v24  ;;  %v1146_v26 = vpop.permute.xlu1 %1145  ;;  %v1470_v24 = vld [vmem:[%s3526_s14] sm:$0xff] }
 0x2e9   : > { %v1148_v27 = vpop.permute.xlu0 %1147 }
 0x2ea   : > { %v1150_v32 = vsel %vm1149_vm9, %v1146_v26, %v1148_v27  ;;  %2316 = vmatprep.subr.msk.mxu1 %vm1149_vm9, %v1148_v27 }
 0x2eb   : > { %1203 = vmatpush1.msra.mxu1 %v1150_v32  ;;  %v1138_v33 = vpop.permute.xlu1 %1137 }
 0x2ec   : > { %1204 = vmatprep.subr.mxu1 %v1114_v10 }
 0x2ed   : > { %v1140_v35 = vpop.permute.xlu0 %1139  ;;  %1205 = vmatpush1.msra.mxu1 %v1113_v8 }
 0x2ee   : > { %v1141_v37 = vsel %vm731_vm0, %v1138_v33, %v1140_v35 }
 0x2ef   : > { %1206 = vmatprep.subr.mxu1 %v1141_v37  ;;  %v1129_v39 = vpop.permute.xlu1 %1128 }
 0x2f0   : > { %2318 = vmatpush1.msk.msra.mxu1 %vm3074_vm15, %v1138_v33 }
 0x2f1   : > { %v1131_v40 = vpop.permute.xlu0 %1130 }
 0x2f2   : > { %v1133_v43 = vsel %vm3576_vm14, %v1129_v39, %v1131_v40 }
 0x2f3   : > { %1208 = vmatprep.subr.mxu1 %v1133_v43  ;;  %v1120_v44 = vpop.permute.xlu1 %1119 }
 0x2f4   : > { %2320 = vmatpush1.msk.msra.mxu1 %vm3082_vm12, %v1129_v39 }
 0x2f5   : > { %v1122_v48 = vpop.permute.xlu0 %1121 }
 0x2f6   : > { %v1124_v51 = vsel %vm3572_vm11, %v1120_v44, %v1122_v48 }
 0x2f7   : > { %1210 = vmatprep.subr.mxu1 %v1124_v51  ;;  %v1381_v53 = vpop.permute.xlu1 %1380 }
 0x2f8   : > { %2322 = vmatpush1.msk.msra.mxu1 %vm3090_vm6, %v1120_v44 }
 0x2f9   : > { %v1383_v54 = vpop.permute.xlu0 %1382  ;;  %2323 = vmatmul.mubr.msk.f32.vlgmr.msra.gmra.mxu1 %vm1038_vm13, %v1115_v52 }
 0x2fa   : > { %v1384_v55 = vsel %vm1167_vm10, %v1381_v53, %v1383_v54  ;;  %2325 = vmatprep.subr.msk.mxu1 %vm1167_vm10, %v1383_v54  ;;  %1460 = vmatprep.mubr.f32.mxu1 %v2622_v0 }
 0x2fb   : > { %1415 = vmatpush1.msra.mxu1 %v1384_v55  ;;  %v1373_v56 = vpop.permute.xlu1 %1372 }
 0x2fd   : > { %v1375_v57 = vpop.permute.xlu0 %1374 }
 0x2fe   : > { %v1376_v58 = vsel %vm1158_vm8, %v1373_v56, %v1375_v57  ;;  %2326 = vmatprep.subr.msk.mxu1 %vm1158_vm8, %v1375_v57 }
 0x2ff   : > { %1417 = vmatpush1.msra.mxu1 %v1376_v58  ;;  %v1365_v59 = vpop.permute.xlu1 %1364 }
 0x301   : > { %v1367_v60 = vpop.permute.xlu0 %1366 }
 0x302   : > { %v1368_v63 = vsel %vm1149_vm9, %v1365_v59, %v1367_v60  ;;  %2327 = vmatprep.subr.msk.mxu1 %vm1149_vm9, %v1367_v60 }
 0x303   : > { %1419 = vmatpush1.msra.mxu1 %v1368_v63  ;;  %v1357_v1 = vpop.permute.xlu1 %1356 }
 0x304   : > { %1420 = vmatprep.subr.mxu1 %v3038_v17 }
 0x305   : > { %v1359_v6 = vpop.permute.xlu0 %1358  ;;  %1421 = vmatpush1.msra.mxu1 %v3035_v16 }
 0x306   : > { %v1360_v7 = vsel %vm731_vm0, %v1357_v1, %v1359_v6 }
 0x307   : > { %1422 = vmatprep.subr.mxu1 %v1360_v7  ;;  %v1349_v8 = vpop.permute.xlu1 %1348  ;;  %v1469_v7 = vld [vmem:[%s3525_s13] sm:$0xff] }
 0x308   : > { %2329 = vmatpush1.msk.msra.mxu1 %vm3074_vm15, %v1357_v1 }
 0x309   : > { %v1351_v9 = vpop.permute.xlu0 %1350 }
 0x30a   : > { %v1352_v10 = vsel %vm3576_vm14, %v1349_v8, %v1351_v9  ;;  %vm3631_vm14 = vcmask 23552  }
 0x30b   : > { %1424 = vmatprep.subr.mxu1 %v1352_v10  ;;  %v1341_v11 = vpop.permute.xlu1 %1340 }
 0x30c   : > { %2331 = vmatpush1.msk.msra.mxu1 %vm3082_vm12, %v1349_v8 }
 0x30d   : > { %v1343_v12 = vpop.permute.xlu0 %1342 }
 0x30e   : > { %v1344_v13 = vsel %vm3572_vm11, %v1341_v11, %v1343_v12  ;;  %vm3623_vm11 = vcmp.lt.s32.totalorder %v2944_v34, 16 }
 0x30f   : > { %1426 = vmatprep.subr.mxu1 %v1344_v13 }
 0x310   : > { %2333 = vmatpush1.msk.msra.mxu1 %vm3090_vm6, %v1341_v11 }
 0x311   : > { %2334 = vmatmul.mubr.msk.f32.vlgmr.msra.gmra.mxu1 %vm1038_vm13, %v1336_v14 }
 0x312   : > { %1738 = vmatprep.mubr.f32.mxu1 %v2622_v0 }
 0x318   : > { %v1391_v17 = vpop.permute.xlu1 %1390 }
 0x3b9   : > { %v3121_v15 = vpop.f32.mrf.mxu1 }
 0x3bb   : > { %v3123_v16 = vpop.f32.mrf.mxu1 }
 0x3d1   : > { %v1462_v18 = vpop.f32.mrf.mxu1 }
 0x3d2   : > { %v1463_v19 = vadd.f32 %v1462_v18, %v1391_v17 }
 0x3d3   : > { %v1464_v20 = vpop.f32.mrf.mxu1 }
 0x3d4   : > { %v1467_v21 = vmax.f32 %v1463_v19, 0.0  ;;  %v1465_v22 = vadd.f32 %v1464_v20, %v1391_v17  ;;  %v1615_v17 = vld [vmem:[%s3528_s16] sm:$0xff] }
 0x3d6   : > { %1493 = vrot.lane.b32.xlu0 %v1467_v21, %s3579_s24  ;;  %1523 = vrot.lane.b32.xlu1 %v1467_v21, %s3567_s29  ;;  %v1468_v23 = vmax.f32 %v1465_v22, 0.0 }
 0x3da   : > { %1525 = vrot.lane.b32.xlu0 %v1468_v23, %s3567_s29  ;;  %1513 = vrot.lane.b32.xlu1 %v1467_v21, %s3577_s1  ;;  %s3636_s29 = smov 80  }
 0x3de   : > { %1515 = vrot.lane.b32.xlu0 %v1468_v23, %s3577_s1  ;;  %1503 = vrot.lane.b32.xlu1 %v1467_v21, %s3617_s23  ;;  %s3638_s1 = smov 32  }
 0x3e2   : > { %1505 = vrot.lane.b32.xlu0 %v1468_v23, %s3617_s23  ;;  %1495 = vrot.lane.b32.xlu1 %v1468_v23, %s3579_s24  ;;  %s3640_s24 = smov 1  }
 0x3e6   : > { %1483 = vrot.lane.b32.xlu0 %v1467_v21, %s3618_s22  ;;  %1485 = vrot.lane.b32.xlu1 %v1468_v23, %s3618_s22 }
 0x3ea   : > { %1473 = vrot.lane.b32.xlu0 %v1467_v21, %s3619_s26  ;;  %1475 = vrot.lane.b32.xlu1 %v1468_v23, %s3619_s26 }
 0x3ee   : > { %1535 = vperm.xlu0 %2468, %v1470_v24  }
 0x448   : > { %v1494_v26 = vpop.permute.xlu0 %1493  ;;  %v1524_v27 = vpop.permute.xlu1 %1523 }
 0x44c   : > { %v1526_v32 = vpop.permute.xlu0 %1525  ;;  %v1514_v33 = vpop.permute.xlu1 %1513 }
 0x44d   : > { %v1527_v35 = vsel %vm3569_vm1, %v1524_v27, %v1526_v32  ;;  %v1530_v37 = vsel %vm3569_vm1, %v1526_v32, 0.0  ;;  %vm3620_vm1 = vcmask 1039360  }
 0x44e   : > { %2335 = vmatprep.subr.msk.mxu0 %vm3570_vm2, %v1530_v37  ;;  %vm3621_vm2 = vmmov %vm3620_vm1 }
 0x44f   : > { %2336 = vmatpush1.msk.msra.mxu0 %vm3571_vm4, %v1527_v35  ;;  %vm3622_vm4 = vcmp.lt.s32.totalorder %v2941_v31, 16 }
 0x450   : > { %v1516_v39 = vpop.permute.xlu0 %1515  ;;  %v1504_v40 = vpop.permute.xlu1 %1503 }
 0x451   : > { %v1517_v43 = vsel %vm3573_vm3, %v1514_v33, %v1516_v39  ;;  %v1520_v44 = vsel %vm3573_vm3, %v1516_v39, 0.0  ;;  %vm3624_vm3 = vcmask 7168  }
 0x452   : > { %2337 = vmatprep.subr.msk.mxu0 %vm3574_vm5, %v1520_v44  ;;  %vm3625_vm5 = vmmov %vm3624_vm3 }
 0x453   : > { %2338 = vmatpush1.msk.msra.mxu0 %vm3575_vm7, %v1517_v43  ;;  %v1500_v57 = vsel %vm3625_vm5, 0.0, %v1494_v26  ;;  %vm3626_vm7 = vcmp.ge.s32.totalorder %v2956_v38, 0  ;;  %vm3633_vm5 = vcmp.ge.s32.totalorder %v2972_v46, 0 }
 0x454   : > { %v1506_v48 = vpop.permute.xlu0 %1505  ;;  %v1496_v51 = vpop.permute.xlu1 %1495 }
 0x455   : > { %v1507_v52 = vsel %vm3620_vm1, %v1504_v40, %v1506_v48  ;;  %v1510_v53 = vsel %vm3621_vm2, %v1506_v48, 0.0  ;;  %v1497_v56 = vsel %vm3624_vm3, %v1494_v26, %v1496_v51  ;;  %vm3627_vm1 = vcmask 15360   ;;  %vm3632_vm3 = vmmov %vm3631_vm14  ;;  %v1614_v51 = vld [vmem:[#allocation5] sm:$0xff] }
 0x456   : > { %2339 = vmatprep.subr.msk.mxu0 %vm3622_vm4, %v1510_v53  ;;  %vm3628_vm2 = vcmp.ge.s32.totalorder %v2962_v42, 0  ;;  %vm3629_vm4 = vmmov %vm3627_vm1 }
 0x457   : > { %2340 = vmatpush1.msk.msra.mxu0 %vm3623_vm11, %v1507_v52  ;;  %vm3630_vm11 = vcmp.ge.s32.totalorder %v2968_v45, 0 }
 0x458   : > { %v1484_v54 = vpop.permute.xlu0 %1483  ;;  %1565 = vmatprep.subr.mxu0 %v1468_v23  ;;  %v1486_v55 = vpop.permute.xlu1 %1485 }
 0x459   : > { %1566 = vmatpush1.msra.mxu0 %v1467_v21  ;;  %v1487_v58 = vsel %vm3627_vm1, %v1484_v54, %v1486_v55  ;;  %v1490_v59 = vsel %vm3629_vm4, 0.0, %v1484_v54  ;;  %vm3635_vm1 = vcmp.ge.s32.totalorder %v2981_v50, 0 }
 0x45a   : > { %2341 = vmatprep.subr.msk.mxu0 %vm3626_vm7, %v1497_v56  ;;  %vm3634_vm7 = vcmp.ge.s32.totalorder %v2977_v47, 0 }
 0x45b   : > { %2342 = vmatpush1.msk.msra.mxu0 %vm3628_vm2, %v1500_v57 }
 0x45c   : > { %v1474_v60 = vpop.permute.xlu0 %1473  ;;  %2343 = vmatprep.subr.msk.mxu0 %vm3630_vm11, %v1487_v58  ;;  %v1476_v63 = vpop.permute.xlu1 %1475  ;;  %vm3648_vm11 = vcmp.ge.s32.totalorder %v2956_v38, 0 }
 0x45d   : > { %v1480_v1 = vsel %vm3631_vm14, 0.0, %v1474_v60  ;;  %v1477_v6 = vsel %vm3632_vm3, %v1474_v60, %v1476_v63  ;;  %2344 = vmatpush1.msk.msra.mxu0 %vm3633_vm5, %v1490_v59  ;;  %vm1904_vm14 = vcmask 138240   ;;  %vm3650_vm5 = vcmp.lt.s32.totalorder %v2941_v31, 16 }
 0x45e   : > { %2345 = vmatprep.subr.msk.mxu0 %vm3634_vm7, %v1477_v6 }
 0x45f   : > { %2346 = vmatpush1.msk.msra.mxu0 %vm3635_vm1, %v1480_v1  ;;  %vm3652_vm1 = vmmov %vm3648_vm11 }
 0x460   : > { %2347 = vmatmul.mubr.msk.f32.vlgmr.msra.gmra.mxu0 %vm1038_vm13, %v1469_v7 }
 0x461   : > { %1883 = vmatprep.mubr.f32.mxu0 %v2622_v0 }
 0x469   : > { %v1536_v8 = vpop.permute.xlu0 %1535 }
 0x520   : > { %v1607_v9 = vpop.f32.mrf.mxu0 }
 0x521   : > { %v1608_v10 = vadd.f32 %v1607_v9, %v1536_v8 }
 0x522   : > { %v1609_v11 = vpop.f32.mrf.mxu0 }
 0x523   : > { %v3181_v12 = vmax.f32 %v1608_v10, 0.0  ;;  %v1610_v13 = vadd.f32 %v1609_v11, %v1536_v8 }
 0x525   : > { %v3183_v14 = vmax.f32 %v1610_v13, 0.0  ;;  %1658 = vrot.lane.b32.xlu1 %v3181_v12, %s3636_s29 }
 0x527   : > { %1660 = vrot.lane.b32.xlu0 %v3183_v14, %s3636_s29  ;;  %s3639_s29 = smov 48  }
 0x529   : > { %1650 = vrot.lane.b32.xlu1 %v3181_v12, %s3637_s28 }
 0x52b   : > { %1652 = vrot.lane.b32.xlu0 %v3183_v14, %s3637_s28  ;;  %s3584_s28 = smov 111  }
 0x52d   : > { %1642 = vrot.lane.b32.xlu1 %v3181_v12, %s3581_s0 }
 0x52f   : > { %1644 = vrot.lane.b32.xlu0 %v3183_v14, %s3581_s0  ;;  %s2636_s0 = smov 17  }
 0x531   : > { %1634 = vrot.lane.b32.xlu1 %v3181_v12, %s3583_s4 }
 0x533   : > { %1636 = vrot.lane.b32.xlu0 %v3183_v14, %s3583_s4 }
 0x535   : > { %1626 = vrot.lane.b32.xlu1 %v3181_v12, %s3638_s1 }
 0x537   : > { %1628 = vrot.lane.b32.xlu0 %v3183_v14, %s3638_s1  ;;  %s2637_s1 = smov 15  }
 0x539   : > { %1618 = vrot.lane.b32.xlu1 %v3181_v12, %s3639_s29 }
 0x53b   : > { %1620 = vrot.lane.b32.xlu0 %v3183_v14, %s3639_s29  ;;  %s3641_s29 = smov 112  }
 0x53d   : > { %1668 = vperm.xlu1 %2469, %v1615_v17  }
 0x53f   : > { %1900 = vrot.lane.b32.xlu0 %v2869_v3, %s2636_s0 }
 0x541   : > { %1902 = vrot.lane.b32.xlu1 %v2866_v2, %s2636_s0 }
 0x543   : > { %1925 = vrot.lane.b32.xlu0 %v2869_v3, %s3583_s4 }
 0x545   : > { %1927 = vrot.lane.b32.xlu1 %v2866_v2, %s3583_s4 }
 0x547   : > { %1896 = vrot.lane.b32.xlu0 %v2876_v5, %s2636_s0 }
 0x549   : > { %1898 = vrot.lane.b32.xlu1 %v2872_v4, %s2636_s0  ;;  %s2638_s0 = smov 113  }
 0x54b   : > { %1945 = vrot.lane.b32.xlu0 %v2869_v3, %s2637_s1 }
 0x54d   : > { %1947 = vrot.lane.b32.xlu1 %v2866_v2, %s2637_s1 }
 0x54f   : > { %1921 = vrot.lane.b32.xlu0 %v2876_v5, %s3583_s4 }
 0x551   : > { %1923 = vrot.lane.b32.xlu1 %v2872_v4, %s3583_s4 }
 0x553   : > { %1941 = vrot.lane.b32.xlu0 %v2876_v5, %s2637_s1 }
 0x555   : > { %1943 = vrot.lane.b32.xlu1 %v2872_v4, %s2637_s1  ;;  %s3674_s1 = smov 125  }
 0x557   : > { %1970 = vrot.lane.b32.xlu0 %v2869_v3, %s3640_s24 }
 0x559   : > { %1972 = vrot.lane.b32.xlu1 %v2866_v2, %s3640_s24 }
 0x55b   : > { %1966 = vrot.lane.b32.xlu0 %v2876_v5, %s3640_s24 }
 0x55d   : > { %1968 = vrot.lane.b32.xlu1 %v2872_v4, %s3640_s24 }
 0x55f   : > { %2000 = vrot.lane.b32.xlu0 %v2866_v2, %s3617_s23 }
 0x561   : > { %2024 = vrot.lane.b32.xlu1 %v2866_v2, %s2638_s0 }
 0x563   : > { %1998 = vrot.lane.b32.xlu0 %v2869_v3, %s3617_s23 }
 0x565   : > { %1994 = vrot.lane.b32.xlu1 %v2876_v5, %s3617_s23 }
 0x567   : > { %1996 = vrot.lane.b32.xlu0 %v2872_v4, %s3617_s23 }
 0x569   : > { %2018 = vrot.lane.b32.xlu1 %v2876_v5, %s2638_s0 }
 0x56b   : > { %2022 = vrot.lane.b32.xlu0 %v2869_v3, %s2638_s0 }
 0x56d   : > { %2047 = vrot.lane.b32.xlu1 %v2869_v3, %s3641_s29 }
 0x56f   : > { %2020 = vrot.lane.b32.xlu0 %v2872_v4, %s2638_s0  ;;  %s3675_s0 = smov 126  }
 0x571   : > { %2045 = vrot.lane.b32.xlu1 %v2872_v4, %s3641_s29 }
 0x573   : > { %2049 = vrot.lane.b32.xlu0 %v2866_v2, %s3641_s29 }
 0x575   : > { %2043 = vrot.lane.b32.xlu1 %v2876_v5, %s3641_s29 }
 0x577   : > { %2069 = vrot.lane.b32.xlu0 %v2866_v2, %s3584_s28 }
 0x57b   : > { %2067 = vrot.lane.b32.xlu0 %v2869_v3, %s3584_s28 }
 0x57f   : > { %2065 = vrot.lane.b32.xlu0 %v2872_v4, %s3584_s28  ;;  %s3676_s28 = sld [smem:[#allocation18_spill]] }
 0x597   : > { %v1659_v18 = vpop.permute.xlu1 %1658 }
 0x599   : > { %v1661_v19 = vpop.permute.xlu0 %1660 }
 0x59a   : > { %v1662_v20 = vsel %vm1167_vm10, %v1659_v18, %v1661_v19  ;;  %2348 = vmatprep.subr.msk.mxu1 %vm1167_vm10, %v1661_v19  ;;  %vm3643_vm10 = vcmask 392192  }
 0x59b   : > { %1693 = vmatpush1.msra.mxu1 %v1662_v20  ;;  %v1651_v21 = vpop.permute.xlu1 %1650 }
 0x59d   : > { %v1653_v22 = vpop.permute.xlu0 %1652 }
 0x59e   : > { %v1654_v23 = vsel %vm1158_vm8, %v1651_v21, %v1653_v22  ;;  %2349 = vmatprep.subr.msk.mxu1 %vm1158_vm8, %v1653_v22  ;;  %vm3642_vm8 = vcmask 261120  }
 0x59f   : > { %1695 = vmatpush1.msra.mxu1 %v1654_v23  ;;  %v1643_v24 = vpop.permute.xlu1 %1642 }
 0x5a1   : > { %v1645_v26 = vpop.permute.xlu0 %1644 }
 0x5a2   : > { %v1646_v27 = vsel %vm1149_vm9, %v1643_v24, %v1645_v26  ;;  %2350 = vmatprep.subr.msk.mxu1 %vm1149_vm9, %v1645_v26 }
 0x5a3   : > { %1697 = vmatpush1.msra.mxu1 %v1646_v27  ;;  %v1635_v32 = vpop.permute.xlu1 %1634 }
 0x5a4   : > { %1698 = vmatprep.subr.mxu1 %v3183_v14 }
 0x5a5   : > { %v1637_v33 = vpop.permute.xlu0 %1636  ;;  %1699 = vmatpush1.msra.mxu1 %v3181_v12 }
 0x5a6   : > { %v1638_v35 = vsel %vm731_vm0, %v1635_v32, %v1637_v33 }
 0x5a7   : > { %1700 = vmatprep.subr.mxu1 %v1638_v35  ;;  %v1627_v37 = vpop.permute.xlu1 %1626 }
 0x5a8   : > { %2352 = vmatpush1.msk.msra.mxu1 %vm3074_vm15, %v1635_v32  ;;  %vm3645_vm15 = vcmp.lt.s32.totalorder %v2944_v34, 16 }
 0x5a9   : > { %v1629_v39 = vpop.permute.xlu0 %1628  ;;  %vm3651_vm7 = vmmov %vm3645_vm15 }
 0x5aa   : > { %v1630_v40 = vsel %vm3642_vm8, %v1627_v37, %v1629_v39 }
 0x5ab   : > { %1702 = vmatprep.subr.mxu1 %v1630_v40  ;;  %v1619_v43 = vpop.permute.xlu1 %1618 }
 0x5ac   : > { %2354 = vmatpush1.msk.msra.mxu1 %vm3082_vm12, %v1627_v37  ;;  %vm3644_vm12 = vmmov %vm3628_vm2  ;;  %vm3646_vm2 = vcmask 7168  }
 0x5ad   : > { %v1621_v44 = vpop.permute.xlu0 %1620  ;;  %vm3647_vm4 = vmmov %vm3644_vm12 }
 0x5ae   : > { %v1622_v48 = vsel %vm3643_vm10, %v1619_v43, %v1621_v44  ;;  %vm3649_vm3 = vmmov %vm3647_vm4  ;;  %vm3654_vm10 = vcmask 1039360  }
 0x5af   : > { %1704 = vmatprep.subr.mxu1 %v1622_v48  ;;  %vm3653_vm8 = vmmov %vm3646_vm2 }
 0x5b0   : > { %2356 = vmatpush1.msk.msra.mxu1 %vm3090_vm6, %v1619_v43  ;;  %vm1949_vm6 = vcmask 121856  }
 0x5b1   : > { %2357 = vmatmul.mubr.msk.f32.vlgmr.msra.gmra.mxu1 %vm1038_vm13, %v1614_v51  ;;  %v1901_v36 = vpop.permute.xlu0 %1900 }
 0x5b2   : > { %2162 = vmatprep.mubr.f32.mxu1 %v2622_v0  ;;  %v1912_v17 = vsel %vm1904_vm14, 0.0, %v1901_v36 }
 0x5b3   : > { %v1915_v23 = vsel %vm3649_vm3, %v1912_v17, 0.0 }
 0x5b5   : > { %v1926_v52 = vpop.permute.xlu0 %1925 }
 0x5b6   : > { %v1936_v24 = vsel %vm731_vm0, 0.0, %v1926_v52 }
 0x5b7   : > { %v1939_v39 = vadd.f32 %v1936_v24, %v1915_v23 }
 0x5b8   : > { %v3282_v54 = vpop.permute.xlu1 %1668 }
 0x5b9   : > { %v1897_v53 = vpop.permute.xlu0 %1896 }
 0x5ba   : > { %v1911_v41 = vsel %vm1904_vm14, 0.0, %v1897_v53 }
 0x5bb   : > { %v1913_v56 = vsel %vm3644_vm12, %v1911_v41, 0.0  ;;  %vm3656_vm12 = vmmov %vm3652_vm1 }
 0x5bc   : > { %v1903_v57 = vpop.permute.xlu1 %1902 }
 0x5bd   : > { %v1946_v55 = vpop.permute.xlu0 %1945  ;;  %v1906_v11 = vsel %vm1904_vm14, %v1901_v36, %v1903_v57 }
 0x5be   : > { %v1916_v18 = vsel %vm3648_vm11, %v1906_v11, 0.0  ;;  %v1957_v27 = vsel %vm1949_vm6, 0.0, %v1946_v55  ;;  %vm2026_vm11 = vcmask 924672  }
 0x5bf   : > { %v1960_v40 = vsel %vm3651_vm7, %v1957_v27, 0.0  ;;  %vm3663_vm7 = vmmov %vm3652_vm1 }
 0x5c0   : > { %v1928_v60 = vpop.permute.xlu1 %1927 }
 0x5c1   : > { %v1922_v58 = vpop.permute.xlu0 %1921  ;;  %v1930_v19 = vsel %vm731_vm0, %v1926_v52, %v1928_v60 }
 0x5c2   : > { %v1935_v49 = vsel %vm731_vm0, 0.0, %v1922_v58  ;;  %v1940_v26 = vadd.f32 %v1930_v19, %v1916_v18 }
 0x5c3   : > { %v1937_v59 = vadd.f32 %v1935_v49, %v1913_v56  ;;  %v1964_v56 = vadd.f32 %v1960_v40, %v1939_v39 }
 0x5c4   : > { %v1899_v7 = vpop.permute.xlu1 %1898 }
 0x5c5   : > { %v1942_v0 = vpop.permute.xlu0 %1941  ;;  %v1905_v32 = vsel %vm1904_vm14, %v1897_v53, %v1899_v7  ;;  %vm3655_vm14 = vmmov %vm3646_vm2 }
 0x5c6   : > { %v1956_v63 = vsel %vm1949_vm6, 0.0, %v1942_v0  ;;  %v1914_v43 = vsel %vm3652_vm1, %v1905_v32, 0.0 }
 0x5c7   : > { %v1958_v1 = vsel %vm3645_vm15, %v1956_v63, 0.0  ;;  %vm3657_vm15 = vmmov %vm3649_vm3 }
 0x5c8   : > { %v1962_v6 = vadd.f32 %v1958_v1, %v1937_v59  ;;  %v1948_v9 = vpop.permute.xlu1 %1947  ;;  %vm3661_vm3 = vmmov %vm3652_vm1  ;;  %vm3664_vm1 = vcmp.lt.s32.totalorder %v2944_v34, 16  ;;  %v1747_v34 = vld [vmem:[%s3529_s17] sm:$0xff] }
 0x5c9   : > { %v1971_v8 = vpop.permute.xlu0 %1970  ;;  %v1951_v22 = vsel %vm1949_vm6, %v1946_v55, %v1948_v9 }
 0x5ca   : > { %v1961_v33 = vsel %vm3650_vm5, %v1951_v22, 0.0  ;;  %v1981_v51 = vsel %vm3653_vm8, 0.0, %v1971_v8 }
 0x5cb   : > { %v1965_v44 = vadd.f32 %v1961_v33, %v1940_v26  ;;  %v1984_v59 = vsel %vm3657_vm15, %v1981_v51, 0.0 }
 0x5cc   : > { %v1924_v20 = vpop.permute.xlu1 %1923 }
 0x5cd   : > { %v1967_v10 = vpop.permute.xlu0 %1966  ;;  %v1929_v48 = vsel %vm731_vm0, %v1922_v58, %v1924_v20 }
 0x5ce   : > { %v1980_v12 = vsel %vm3646_vm2, 0.0, %v1967_v10  ;;  %v1938_v57 = vadd.f32 %v1929_v48, %v1914_v43  ;;  %vm3658_vm2 = vmmov %vm3650_vm5 }
 0x5cf   : > { %v1982_v13 = vsel %vm3647_vm4, %v1980_v12, 0.0  ;;  %vm3660_vm4 = vmmov %vm3653_vm8 }
 0x5d0   : > { %v1986_v14 = vadd.f32 %v1982_v13, %v1962_v6  ;;  %v1944_v35 = vpop.permute.xlu1 %1943  ;;  %vm3662_vm5 = vmmov %vm3654_vm10 }
 0x5d1   : > { %v2001_v21 = vpop.permute.xlu0 %2000  ;;  %v1950_v36 = vsel %vm1949_vm6, %v1942_v0, %v1944_v35  ;;  %vm3659_vm6 = vmmov %vm3658_vm2 }
 0x5d2   : > { %v2009_v41 = vsel %vm3654_vm10, %v2001_v21, 0.0  ;;  %v1959_v58 = vsel %vm3658_vm2, %v1950_v36, 0.0  ;;  %v1990_v24 = vadd.f32 %v1986_v14, %v2876_v5  ;;  %vm3665_vm8 = vmmov %vm3662_vm5 }
 0x5d3   : > { %v2013_v0 = vsel %vm3659_vm6, %v2009_v41, 0.0  ;;  %v1963_v9 = vadd.f32 %v1959_v58, %v1938_v57  ;;  %vm3666_vm10 = vmmov %vm3662_vm5 }
 0x5d4   : > { %v1973_v52 = vpop.permute.xlu1 %1972  ;;  %vm3668_vm15 = vmmov %vm3658_vm2  ;;  %vm3669_vm2 = vcmp.ge.s32.totalorder %v2962_v42, 0 }
 0x5d5   : > { %v1999_v37 = vpop.permute.xlu0 %1998  ;;  %v1975_v55 = vsel %vm3655_vm14, %v1971_v8, %v1973_v52  ;;  %v1988_v8 = vadd.f32 %v1984_v59, %v1964_v56  ;;  %vm3667_vm14 = vmmov %vm3664_vm1 }
 0x5d6   : > { %v1985_v49 = vsel %vm3656_vm12, %v1975_v55, 0.0  ;;  %v2003_v13 = vsel %vm3662_vm5, %v1999_v37, %v2001_v21  ;;  %vm2071_vm12 = vcmask 908288   ;;  %vm3670_vm6 = vmmov %vm3669_vm2 }
 0x5d7   : > { %v1989_v60 = vadd.f32 %v1985_v49, %v1965_v44  ;;  %v1992_v20 = vadd.f32 %v1988_v8, %v2869_v3 }
 0x5d8   : > { %v1969_v63 = vpop.permute.xlu1 %1968 }
 0x5d9   : > { %v1997_v53 = vpop.permute.xlu0 %1996  ;;  %v1993_v6 = vadd.f32 %v1989_v60, %v2866_v2  ;;  %v1974_v7 = vsel %vm3660_vm4, %v1967_v10, %v1969_v63  ;;  %v2012_v10 = vsel %vm3664_vm1, %v2003_v13, 0.0  ;;  %vm3671_vm4 = vmmov %vm3668_vm15 }
 0x5da   : > { %v1983_v11 = vsel %vm3661_vm3, %v1974_v7, 0.0  ;;  %v2008_v26 = vsel %vm3665_vm8, %v1997_v53, 0.0  ;;  %v2016_v35 = vadd.f32 %v2012_v10, %v1992_v20  ;;  %vm3673_vm5 = vmmov %vm3671_vm4  ;;  %vm3681_vm8 = vcmp.lt.s32.totalorder %v2934_v28, 16 }
 0x5db   : > { %v2017_v12 = vadd.f32 %v2013_v0, %v1993_v6  ;;  %v1987_v22 = vadd.f32 %v1983_v11, %v1963_v9  ;;  %v2011_v5 = vsel %vm3668_vm15, %v2008_v26, 0.0  ;;  %vm3684_vm15 = vcmp.lt.s32.totalorder %v2936_v29, 16 }
 0x5dc   : > { %v2025_v17 = vpop.permute.xlu1 %2024 }
 0x5dd   : > { %v2023_v1 = vpop.permute.xlu0 %2022  ;;  %v2034_v19 = vsel %vm2026_vm11, %v2025_v17, 0.0  ;;  %v1991_v37 = vadd.f32 %v1987_v22, %v2872_v4 }
 0x5de   : > { %v2038_v2 = vsel %vm3663_vm7, %v2034_v19, 0.0  ;;  %v2028_v21 = vsel %vm2026_vm11, %v2023_v1, %v2025_v17 }
 0x5df   : > { %v2042_v23 = vadd.f32 %v2038_v2, %v2017_v12  ;;  %v2037_v14 = vsel %vm3669_vm2, %v2028_v21, 0.0  ;;  %vm3685_vm2 = vcmask 1039360  }
 0x5e0   : > { %v1995_v27 = vpop.permute.xlu1 %1994  ;;  %v2041_v52 = vadd.f32 %v2037_v14, %v2016_v35 }
 0x5e1   : > { %v2021_v18 = vpop.permute.xlu0 %2020  ;;  %v2002_v33 = vsel %vm3666_vm10, %v1995_v27, %v1997_v53  ;;  %v2015_v53 = vadd.f32 %v2011_v5, %v1991_v37  ;;  %v1748_v27 = vld [vmem:[%s3530_s18] sm:$0xff]  ;;  %vm3682_vm10 = vcmask 1031168  }
 0x5e2   : > { %v2010_v39 = vsel %vm3667_vm14, %v2002_v33, 0.0  ;;  %v2033_v44 = vsel %vm2026_vm11, %v2021_v18, 0.0  ;;  %v1116_v33 = vld [vmem:[%s3520_s8] sm:$0xff]  ;;  %vm3683_vm14 = vmmov %vm3682_vm10 }
 0x5e3   : > { %v2014_v40 = vadd.f32 %v2010_v39, %v1990_v24  ;;  %v2036_v56 = vsel %vm3661_vm3, %v2033_v44, 0.0  ;;  %vm3688_vm3 = vmmov %vm3673_vm5 }
 0x5e4   : > { %v2019_v48 = vpop.permute.xlu1 %2018  ;;  %v2040_v63 = vadd.f32 %v2036_v56, %v2015_v53 }
 0x5e5   : > { %v2050_v32 = vpop.permute.xlu0 %2049  ;;  %v2027_v36 = vsel %vm2026_vm11, %v2019_v48, %v2021_v18  ;;  %vm3672_vm11 = vmmov %vm3664_vm1  ;;  %vm3680_vm1 = vcmp.lt.s32.totalorder %v2932_v25, 16 }
 0x5e6   : > { %v2058_v3 = vsel %vm1149_vm9, %v2050_v32, 0.0  ;;  %v2035_v41 = vsel %vm3670_vm6, %v2027_v36, 0.0  ;;  %vm3686_vm6 = vcmp.lt.s32.totalorder %v2938_v30, 16 }
 0x5e7   : > { %v2062_v43 = vadd.f32 %v2058_v3, %v2042_v23  ;;  %v2039_v57 = vadd.f32 %v2035_v41, %v2014_v40  ;;  %v2089_v3 = vld [vmem:[%s3532_s20] sm:$0xff] }
 0x5e8   : > { %v2048_v59 = vpop.permute.xlu1 %2047 }
 0x5e9   : > { %v2070_v51 = vpop.permute.xlu0 %2069  ;;  %v2052_v60 = vsel %vm1149_vm9, %v2048_v59, %v2050_v32  ;;  %v2470_v32 = vld [vmem:[%s2863_s30] sm:$0xff]  ;;  %v2088_v59 = vld [vmem:[#allocation7] sm:$0xff]  ;;  %s2640_s30 = smov [#allocation8]  }
 0x5ea   : > { %v2079_v4 = vsel %vm2071_vm12, %v2070_v51, 0.0  ;;  %v2061_v1 = vadd.f32 %v2052_v60, %v2041_v52 }
 0x5eb   : > { %v2083_v55 = vsel %vm3671_vm4, %v2079_v4, 0.0  ;;  %vm3687_vm4 = vmmov %vm3685_vm2 }
 0x5ec   : > { %v2087_v49 = vadd.f32 %v2083_v55, %v2062_v43  ;;  %v2046_v8 = vpop.permute.xlu1 %2045 }
 0x5ed   : > { %v2068_v58 = vpop.permute.xlu0 %2067  ;;  %v2057_v11 = vsel %vm1149_vm9, %v2046_v8, 0.0 }
 0x5ee   : > { %v2073_v0 = vsel %vm2071_vm12, %v2068_v58, %v2070_v51  ;;  %2126 = vmatprep.subr.mxu1 %v2087_v49  ;;  %v2060_v13 = vadd.f32 %v2057_v11, %v2040_v63 }
 0x5ef   : > { %v2082_v6 = vsel %vm3672_vm11, %v2073_v0, 0.0 }
 0x5f0   : > { %v2086_v7 = vadd.f32 %v2082_v6, %v2061_v1  ;;  %v2044_v18 = vpop.permute.xlu1 %2043 }
 0x5f1   : > { %v3359_v9 = vpop.permute.xlu0 %2065  ;;  %v2051_v20 = vsel %vm1149_vm9, %v2044_v18, %v2046_v8  ;;  %vm3678_vm9 = vcmask 1022976  }
 0x5f2   : > { %v2078_v12 = vsel %vm2071_vm12, %v3359_v9, 0.0  ;;  %2127 = vmatpush1.msra.mxu1 %v2086_v7  ;;  %v3367_v22 = vadd.f32 %v2051_v20, %v2039_v57  ;;  %vm3679_vm7 = vmmov %vm3678_vm9 }
 0x5f3   : > { %v2081_v17 = vsel %vm3673_vm5, %v2078_v12, 0.0  ;;  %vm3689_vm5 = vcmask 7168  }
 0x5f4   : > { %v2085_v19 = vadd.f32 %v2081_v17, %v2060_v13 }
 0x5f6   : > { %2128 = vmatprep.subr.mxu1 %v2085_v19 }
 0x671   : > { %v1740_v2 = vpop.f32.mrf.mxu1 }
 0x672   : > { %v1741_v10 = vadd.f32 %v1740_v2, %v3282_v54 }
 0x673   : > { %v1742_v23 = vpop.f32.mrf.mxu1 }
 0x674   : > { %v1745_v24 = vmax.f32 %v1741_v10, 0.0  ;;  %v1743_v26 = vadd.f32 %v1742_v23, %v3282_v54  ;;  %v725_v54 = vld [vmem:[%s3676_s28] sm:$0xff] }
 0x676   : > { %v1746_v21 = vmax.f32 %v1743_v26, 0.0  ;;  %1801 = vrot.lane.b32.xlu1 %v1745_v24, %s3674_s1 }
 0x678   : > { %1803 = vrot.lane.b32.xlu0 %v1746_v21, %s3674_s1 }
 0x67a   : > { %1791 = vrot.lane.b32.xlu1 %v1745_v24, %s3675_s0 }
 0x67c   : > { %1783 = vrot.lane.b32.xlu0 %v1746_v21, %s3617_s23 }
 0x67e   : > { %1781 = vrot.lane.b32.xlu1 %v1745_v24, %s3617_s23  ;;  %s3677_s23 = smov 111  }
 0x680   : > { %1773 = vrot.lane.b32.xlu0 %v1746_v21, %s3640_s24 }
 0x682   : > { %1771 = vrot.lane.b32.xlu1 %v1745_v24, %s3640_s24 }
 0x684   : > { %1763 = vrot.lane.b32.xlu0 %v1746_v21, %s3618_s22 }
 0x686   : > { %1793 = vrot.lane.b32.xlu1 %v1746_v21, %s3675_s0 }
 0x688   : > { %1751 = vrot.lane.b32.xlu0 %v1745_v24, %s3619_s26 }
 0x68a   : > { %1761 = vrot.lane.b32.xlu1 %v1745_v24, %s3618_s22  ;;  %s2296_s22 = sshll.u32 %s685_s6, 6 }
 0x68b   : > { %s3448_s29 = scalar_lea.vmem [#allocation8], %s2296_s22 }
 0x68c   : > { %728 = vperm.xlu0 %2468, %v725_v54   ;;  %s2193_s1 = sshll.u32 %s3448_s29, 4  ;;  %s3459_s1 = int_to_ptr.vmem [resolvable:$true] %s2193_s1 }
 0x68d   : > { %s2549_s28 = scalar_lea.vmem %s3459_s1, 1024 }
 0x68e   : > { %2063 = vrot.lane.b32.xlu1 %v2470_v32, %s3677_s23  ;;  %s2378_s23 = sshll.u32 %s2773_s3, 10  ;;  %s3471_s3 = scalar_lea.sflag [#allocation4], %s685_s6 }
 0x68f   : > { %s3466_s4 = scalar_lea.hbm %s3533_s21, %s2378_s23  ;;  %p2550_p12 = scmp.ne.s32.totalorder %s3459_s1, %s2549_s28 }
 0x690   : > { %1813 = vperm.xlu0 %2468, %v1748_v27  }
 0x691   : > { %p2551_p9 = pnand %p2550_p12, %p3702_p2 }
 0x692   : > { %1753 = vrot.lane.b32.xlu1 %v1746_v21, %s3619_s26  ;;  %s2553_s26 = sshll.u32 %s2640_s30, 4  ;;  %s2554_s26 = int_to_ptr.vmem [resolvable:$false] %s2553_s26 }
 0x693   : > { %p2552_p3 = pneg %p2551_p9  ;;  %s2555_s22 = scalar_lea.vmem %s2554_s26, 2048 }
 0x694   : > { %p2556_p4 = scmp.lt.s32.totalorder %s3459_s1, %s2554_s26  ;;  %p2557_p5 = scmp.lt.s32.totalorder %s2555_s22, %s2549_s28 }
 0x696   : > { %1174 = vperm.xlu1 %2469, %v1116_v33   ;;  %p2558_p6 = por %p2557_p5, %p2556_p4 }
 0x698   : > { %p2559_p10 = pnand %p2558_p6, %p2552_p3 }
 0x69a   : > { %2092 = vperm.xlu1 %2469, %v2089_v3  }
 0x6e8   : > { %v1802_v35 = vpop.permute.xlu1 %1801 }
 0x6ea   : > { %v1804_v37 = vpop.permute.xlu0 %1803 }
 0x6eb   : > { %v1805_v39 = vsel %vm3678_vm9, %v1802_v35, %v1804_v37  ;;  %v1808_v5 = vsel %vm3679_vm7, %v1804_v37, 0.0  ;;  %vm3690_vm9 = vmmov %vm3689_vm5  ;;  %vm3691_vm7 = vcmp.ge.s32.totalorder %v2956_v38, 0 }
 0x6ec   : > { %2358 = vmatprep.subr.msk.mxu0 %vm3680_vm1, %v1808_v5  ;;  %v1792_v14 = vpop.permute.xlu1 %1791  ;;  %vm3692_vm1 = vcmask 15360  }
 0x6ed   : > { %2359 = vmatpush1.msk.msra.mxu0 %vm3681_vm8, %v1805_v39  ;;  %vm3693_vm8 = vcmp.ge.s32.totalorder %v2962_v42, 0 }
 0x6ee   : > { %v1784_v43 = vpop.permute.xlu0 %1783 }
 0x6ef   : > { %v1788_v52 = vsel %vm3685_vm2, %v1784_v43, 0.0  ;;  %vm3697_vm2 = vcmp.ge.s32.totalorder %v2972_v46, 0 }
 0x6f0   : > { %v1782_v40 = vpop.permute.xlu1 %1781 }
 0x6f1   : > { %v1785_v25 = vsel %vm3687_vm4, %v1782_v40, %v1784_v43  ;;  %vm3700_vm4 = vcmp.ge.s32.totalorder %v2977_v47, 0 }
 0x6f2   : > { %v1774_v48 = vpop.permute.xlu0 %1773 }
 0x6f4   : > { %v1772_v44 = vpop.permute.xlu1 %1771 }
 0x6f5   : > { %v1775_v29 = vsel %vm3689_vm5, %v1772_v44, %v1774_v48  ;;  %v1778_v41 = vsel %vm3690_vm9, 0.0, %v1772_v44 }
 0x6f6   : > { %v1764_v53 = vpop.permute.xlu0 %1763 }
 0x6f8   : > { %v1794_v51 = vpop.permute.xlu1 %1793 }
 0x6f9   : > { %v1795_v36 = vsel %vm3682_vm10, %v1792_v14, %v1794_v51  ;;  %v1798_v4 = vsel %vm3683_vm14, %v1794_v51, 0.0  ;;  %vm3694_vm10 = vmmov %vm3692_vm1 }
 0x6fa   : > { %2360 = vmatprep.subr.msk.mxu0 %vm3684_vm15, %v1798_v4  ;;  %vm3695_vm14 = vmmov %vm3672_vm11  ;;  %vm3696_vm15 = vcmp.ge.s32.totalorder %v2968_v45, 0  ;;  %v1752_v38 = vpop.permute.xlu0 %1751 }
 0x6fb   : > { %2361 = vmatpush1.msk.msra.mxu0 %vm3686_vm6, %v1795_v36 }
 0x6fc   : > { %2362 = vmatprep.subr.msk.mxu0 %vm3688_vm3, %v1788_v52  ;;  %v1762_v28 = vpop.permute.xlu1 %1761  ;;  %vm3701_vm3 = vcmp.ge.s32.totalorder %v2981_v50, 0 }
 0x6fd   : > { %2363 = vmatpush1.msk.msra.mxu0 %vm3672_vm11, %v1785_v25  ;;  %v1765_v55 = vsel %vm3692_vm1, %v1762_v28, %v1764_v53  ;;  %v1768_v56 = vsel %vm3694_vm10, 0.0, %v1762_v28 }
 0x6fe   : > { %1843 = vmatprep.subr.mxu0 %v1746_v21 }
 0x6ff   : > { %1844 = vmatpush1.msra.mxu0 %v1745_v24 }
 0x700   : > { %2364 = vmatprep.subr.msk.mxu0 %vm3691_vm7, %v1775_v29  ;;  %v2064_v30 = vpop.permute.xlu1 %2063 }
 0x701   : > { %v2072_v31 = vsel %vm2071_vm12, %v2064_v30, %v3359_v9  ;;  %2365 = vmatpush1.msk.msra.mxu0 %vm3693_vm8, %v1778_v41  ;;  %vm3698_vm12 = vcmask 23552  }
 0x702   : > { %v2080_v57 = vsel %vm3695_vm14, %v2072_v31, 0.0  ;;  %2366 = vmatprep.subr.msk.mxu0 %vm3696_vm15, %v1765_v55  ;;  %vm3699_vm6 = vmmov %vm3698_vm12 }
 0x703   : > { %v2084_v49 = vadd.f32 %v2080_v57, %v3367_v22  ;;  %2367 = vmatpush1.msk.msra.mxu0 %vm3697_vm2, %v1768_v56  ;;  %v1758_v60 = vsel %vm3699_vm6, 0.0, %v1752_v38 }
 0x704   : > { %v1754_v58 = vpop.permute.xlu1 %1753 }
 0x705   : > { %v1755_v42 = vsel %vm3698_vm12, %v1752_v38, %v1754_v58  ;;  %2129 = vmatpush1.msra.mxu1 %v2084_v49 }
 0x706   : > { %2368 = vmatprep.subr.msk.mxu0 %vm3700_vm4, %v1755_v42  ;;  %2371 = vmatmul.mubr.msk.f32.vlgmr.msra.gmra.mxu1 %vm731_vm0, %v2088_v59 }
 0x707   : > { %v729_v45 = vpop.permute.xlu0 %728  ;;  %2369 = vmatpush1.msk.msra.mxu0 %vm3701_vm3, %v1758_v60 }
 0x708   : > { %v802_v46 = vadd.f32 %v3020_v61, %v729_v45  ;;  %v804_v0 = vadd.f32 %v3022_v62, %v729_v45  ;;  %2370 = vmatmul.mubr.msk.f32.vlgmr.msra.gmra.mxu0 %vm1038_vm13, %v1747_v34 }
 0x70a   : > { %v806_v63 = vmax.f32 %v802_v46, 0.0  ;;  %v807_v1 = vmax.f32 %v804_v0, 0.0 }
 0x70b   : > { %v1814_v9 = vpop.permute.xlu0 %1813 }
 0x70c   : > { %2171 = vst [vmem:[%s3448_s29] sm:$0xff] %v806_v63  ;;  %2172 = vst [vmem:[%s3448_s29 + $0x8] sm:$0xff] %v807_v1 }
 0x711   : > { %v1175_v47 = vpop.permute.xlu1 %1174 }
 0x712   : > { %v1247_v50 = vadd.f32 %v3121_v15, %v1175_v47  ;;  %v1249_v61 = vadd.f32 %v3123_v16, %v1175_v47 }
 0x714   : > { %v1251_v62 = vmax.f32 %v1247_v50, 0.0  ;;  %v1252_v6 = vmax.f32 %v1249_v61, 0.0 }
 0x715   : > { %v2093_v7 = vpop.permute.xlu1 %2092 }
 0x716   : > { %2173 = vst [vmem:[%s3448_s29 + $0x10] sm:$0xff] %v1251_v62  ;;  %2174 = vst [vmem:[%s3448_s29 + $0x18] sm:$0xff] %v1252_v6 }
 0x7c6   : > { %v2164_v8 = vpop.f32.mrf.mxu1 }
 0x7c7   : > { %v2165_v11 = vadd.f32 %v2164_v8, %v2093_v7 }
 0x7c8   : > { %v1885_v12 = vpop.f32.mrf.mxu0  ;;  %v2166_v13 = vpop.f32.mrf.mxu1 }
 0x7c9   : > { %v2169_v15 = vmax.f32 %v2165_v11, 0.0  ;;  %v1886_v17 = vadd.f32 %v1885_v12, %v1814_v9  ;;  %v2167_v16 = vadd.f32 %v2166_v13, %v2093_v7 }
 0x7ca   : > { %v1887_v18 = vpop.f32.mrf.mxu0 }
 0x7cb   : > { %2177 = vst [vmem:[%s3448_s29 + $0x30] sm:$0xff] %v2169_v15  ;;  %v1890_v19 = vmax.f32 %v1886_v17, 0.0  ;;  %v2170_v20 = vmax.f32 %v2167_v16, 0.0  ;;  %v1888_v22 = vadd.f32 %v1887_v18, %v1814_v9 }
 0x7cd   : > { %2175 = vst [vmem:[%s3448_s29 + $0x20] sm:$0xff] %v1890_v19  ;;  %2178 = vst [vmem:[%s3448_s29 + $0x38] sm:$0xff] %v2170_v20  ;;  %v1891_v2 = vmax.f32 %v1888_v22, 0.0 }
 0x7cf   : > { %2176 = vst [vmem:[%s3448_s29 + $0x28] sm:$0xff] %v1891_v2 }
 0x7d0   : > { %2562 = shalt.err (!%p2559_p10)
}
 0x7d1   : > { %s2563_s6 = scalar_lea.hbm %s3466_s4, 1024  ;;  %s2567_s24 = scalar_lea.hbm %s3533_s21, 2048 }
 0x7d2   : > { %p2564_p7 = scmp.ne.s32.totalorder %s3466_s4, %s2563_s6  ;;  %p2568_p11 = scmp.lt.s32.totalorder %s3466_s4, %s3533_s21 }
 0x7d3   : > { %p2569_p0 = scmp.lt.s32.totalorder %s2567_s24, %s2563_s6 }
 0x7d4   : > { %p2565_p8 = pnand %p2564_p7, %p3702_p2 }
 0x7d5   : > { %p2570_p1 = por %p2569_p0, %p2568_p11 }
 0x7d6   : > { %p2566_p13 = pneg %p2565_p8 }
 0x7d8   : > { %p2571_p12 = pnand %p2570_p1, %p2566_p13 }
 0x7da   : > { %2574 = shalt.err (!%p2571_p12)
}
 0x7db   : > { %s2641_s28 = smov 256   ;;  %s3703_s26 = smov 16  }
 0x7dc   : > { %2391 = dma.vmem_to_hbm [thread:$0]  (%p3702_p2), %s3459_s1, 1024, %s3466_s4, %s3471_s3, %s2641_s28, %s2641_s28, %s3703_s26  }
 0x7dd PF: > { %s3704_s22 = sld [smem:[#allocation15_spill]]  ;;  %p2413_p9 = scmp.ge.s32.totalorder %s2617_s27, 2 }
 0x7de   : > { %s2208_s29 = sand.u32 1, %s2605_s2  }
 0x7df   : > { %s2209_s6 = scalar_lea.sflag [#allocation4], %s2208_s29 }
 0x7e3   : > { %p3705_p3 = scmp.ne.s32.totalorder %s3704_s22, 0 }
 0x7e5   : > { %p2404_p4 = pnand %p2413_p9, %p3705_p3 }
 0x7e7   : > { %p2405_p5 = pneg %p2404_p4 }
 0x7e9   : > { %2600 = dma.done.wait (%p2405_p5), %s2209_s6, 1024  }
 0x7ea   : > { %2602 = vsyncadd (%p2405_p5), %s2209_s6, 4294966272  ;;  %s3706_s27 = sld [smem:[#allocation13_spill]]  ;;  %s3709_s2 = smov %s2609_s25 }
 0x7eb   : > { %s3707_s5 = sld [smem:[#allocation12_spill]] }
 0x7ec   : > { %s3708_s26 = sld [smem:[#allocation14_spill]] }
 0x7f0   : > { %p33_p6 = scmp.ge.s32.totalorder %s3706_s27, 4  }
 0x7f1   : > { %s3710_s25 = smov %s3707_s5 }
 0x7f2   :  { %35 = sbr.rel (!%p33_p6) target bundleno = 13 (0xd), region = 152 }
 0x7f7   :  { %2214 = vsyncpa [#allocation3], 1 }
 0x7f8   :  { %2216 = vsyncpa [#allocation3 + $0x1], 1 }
 0x7f9   :  { %2217 = vsyncpa [#allocation6], 1 }
 0x7fa   :  { %2218 = vsyncpa [#allocation4], 1 }
 0x7fb   :  { %2220 = vsyncpa [#allocation4 + $0x1], 1 }

</bundles_post_ra>
